<compile_context>
chip_gen: v7x
topology: tpu7x:2x2x1
jax: 0.10.0
libtpu: 0.0.40
codegen_flags: <defaults>
</compile_context>

<pallas_src>
import jax
import jax.numpy as jnp
import numpy as np
from jax.experimental import pallas as pl
from jax.experimental.pallas import tpu as pltpu


# ---------------------------------------------------------------------------
# small helpers
# ---------------------------------------------------------------------------
def _round_up(x, m):
    return (x + m - 1) // m * m


def _pick_k_tile(kp, cap=13824):
    """Largest multiple of 128 that divides kp and is <= cap (kp is a multiple of 128)."""
    t = min(kp, cap)
    t -= t % 128
    t = max(t, 128)
    while kp % t:
        t -= 128
    return t


# ---------------------------------------------------------------------------
# offline weight packing
# ---------------------------------------------------------------------------
def _pack_conv_weight(w_oihw):
    """PyTorch (Cout,Cin,5,5) conv weight -> (W_top, W_bot), each (32*Cin, 4*Cout) bf16.

    For pooled pixel (ph,pw), the 8x8 padded-input window [4ph:4ph+8, 4pw:4pw+8]
    is split into a top half (rows 0..3, held by std2 row ph) and a bottom half
    (rows 4..7, held by std2 row ph+1).  Each half is laid out as
    (dc, r4, c4, c) -> dc*16*Cin + (r4*4 + c4)*Cin + c.  Output column
    q*Cout + cout holds the conv output of pool-parity q=(qh,qw).
    """
    w = np.asarray(w_oihw, dtype=np.float32)
    cout, cin, ks, _ = w.shape                      # ks == 5
    c16 = 16 * cin
    wt = np.zeros((2 * c16, 4 * cout), np.float32)  # top std2 row (window rows 0..3)
    wb = np.zeros((2 * c16, 4 * cout), np.float32)  # bottom std2 row (window rows 4..7)
    for qh in range(2):
        for qw in range(2):
            q = 2 * qh + qw
            for kh in range(ks):
                for kw in range(ks):
                    r, s = 2 * qh + kh, 2 * qw + kw        # window-relative (row, col)
                    dr, r4 = divmod(r, 4)
                    dc, c4 = divmod(s, 4)
                    dst = wt if dr == 0 else wb
                    kidx = dc * c16 + (r4 * 4 + c4) * cin
                    dst[kidx:kidx + cin, q * cout:(q + 1) * cout] = w[:, :, kh, kw].T
    return jnp.asarray(wt, jnp.bfloat16), jnp.asarray(wb, jnp.bfloat16)


def prepare_params(params, input_hw):
    """Offline packing: conv weights -> std2 form, fc weight rows permuted to the
    NHWC flatten order the kernels produce (so the forward has no relayouts)."""
    H, W = input_hw
    assert H % 16 == 0 and W % 16 == 0, "Complex2vec kernels require H, W % 16 == 0"

    w1t, w1b = _pack_conv_weight(params["w1"])
    w2t, w2b = _pack_conv_weight(params["w2"])

    ph2, pw2 = H // 16, W // 16                      # pooled2 spatial dims
    f, fc_in = params["wf"].shape
    c2 = params["w2"].shape[0]
    assert fc_in == c2 * ph2 * pw2, "fc in_features inconsistent with input_hw"

    wf = jnp.transpose(params["wf"].reshape(f, c2, ph2, pw2), (2, 3, 1, 0))
    wf = wf.reshape(fc_in, f)
    kp = _round_up(fc_in, 128)
    wf = jnp.pad(wf, ((0, kp - fc_in), (0, 0))).astype(jnp.bfloat16)

    return {
        "w1t": w1t, "w1b": w1b, "b1": params["b1"].reshape(1, -1).astype(jnp.float32),
        "w2t": w2t, "w2b": w2b, "b2": params["b2"].reshape(1, -1).astype(jnp.float32),
        "wf": wf, "bf": params["bf"].reshape(1, -1).astype(jnp.float32),
    }


# ---------------------------------------------------------------------------
# activation re-layout (XLA glue, ~1x input bytes in bf16)
# ---------------------------------------------------------------------------
def _space_to_depth_colpair(x_nhwc):
    """(N,H,W,C) bf16 -> "std2" (N, (PH+1)*PW, 32*C) bf16, PH=H//4, PW=W//4.

    std2[n, r*PW + pw, :] = concat(std[n,r,pw,:], std[n,r,pw+1,:]) where std is the
    zero-padded (pad=2) input space-to-depth'd by 4 with channel order (r4,c4,c).
    """
    N, H, W, C = x_nhwc.shape
    assert H % 4 == 0 and W % 4 == 0
    xp = jnp.pad(x_nhwc, ((0, 0), (2, 2), (2, 2), (0, 0)))
    R0, Q0 = (H + 4) // 4, (W + 4) // 4              # = PH+1, PW+1
    std = xp.reshape(N, R0, 4, Q0, 4, C).transpose(0, 1, 3, 2, 4, 5)
    std = std.reshape(N, R0, Q0, 16 * C)
    std2 = jnp.concatenate([std[:, :, :-1, :], std[:, :, 1:, :]], axis=-1)
    return std2.reshape(N, R0 * (Q0 - 1), 32 * C), (R0 - 1, Q0 - 1)


# ---------------------------------------------------------------------------
# Pallas kernels
# ---------------------------------------------------------------------------
def _make_conv_pool_kernel(ph, pw, cout):
    """Fused conv(k5,s2,p2)+bias+ReLU+maxpool(2,2) for one image of std2 rows."""
    mp = ph * pw

    def kernel(s_ref, wt_ref, wb_ref, b_ref, o_ref):
        x_top = s_ref[pl.ds(0, mp), :]               # std2 rows ph       (window rows 0..3)
        x_bot = s_ref[pl.ds(pw, mp), :]              # std2 rows ph+1     (window rows 4..7)
        acc = jnp.dot(x_top, wt_ref[...], preferred_element_type=jnp.float32)
        acc = acc + jnp.dot(x_bot, wb_ref[...], preferred_element_type=jnp.float32)
        # 2x2 maxpool == max over the 4 pool-parity column groups (bias is per-cout
        # and ReLU is monotone, so relu(max(conv)+b) == pool(relu(conv+b))).
        p01 = jnp.maximum(acc[:, 0 * cout:1 * cout], acc[:, 1 * cout:2 * cout])
        p23 = jnp.maximum(acc[:, 2 * cout:3 * cout], acc[:, 3 * cout:4 * cout])
        pooled = jnp.maximum(p01, p23)
        o_ref[...] = jnp.maximum(pooled + b_ref[...], 0.0).astype(o_ref.dtype)

    return kernel


def _fc_kernel(x_ref, w_ref, b_ref, o_ref, acc_ref):
    """K-tiled linear layer with a VMEM f32 accumulator (init/finalize via pl.when)."""
    @pl.when(pl.program_id(0) == 0)
    def _():
        acc_ref[...] = jnp.zeros_like(acc_ref)

    acc_ref[...] += jnp.dot(x_ref[...], w_ref[...], preferred_element_type=jnp.float32)

    @pl.when(pl.program_id(0) == pl.num_programs(0) - 1)
    def _():
        o_ref[...] = (acc_ref[...] + b_ref[...]).astype(o_ref.dtype)


# ---------------------------------------------------------------------------
# layer wrappers
# ---------------------------------------------------------------------------
def conv_relu_pool(x_nhwc, wt, wb, b):
    """Conv2d(k=5,s=2,p=2) + ReLU + MaxPool2d(2,2); one fused Pallas step per image."""
    n = x_nhwc.shape[0]
    s2, (ph, pw) = _space_to_depth_colpair(x_nhwc.astype(jnp.bfloat16))
    r_all, k2 = s2.shape[1], s2.shape[2]
    cout = wt.shape[1] // 4
    mp = ph * pw

    out = pl.pallas_call(
        _make_conv_pool_kernel(ph, pw, cout),
        out_shape=jax.ShapeDtypeStruct((n, mp, cout), jnp.bfloat16),
        grid=(n,),
        in_specs=[pl.BlockSpec((None, r_all, k2), lambda i: (i, 0, 0)),   # per-image std2 slab
                  pl.BlockSpec((k2, 4 * cout), lambda i: (0, 0)),         # resident weights
                  pl.BlockSpec((k2, 4 * cout), lambda i: (0, 0)),
                  pl.BlockSpec((1, cout), lambda i: (0, 0))],             # resident bias
        out_specs=pl.BlockSpec((None, mp, cout), lambda i: (i, 0, 0)),
        compiler_params=pltpu.CompilerParams(dimension_semantics=("parallel",)),
    )(s2, wt, wb, b)
    # rows are already in (ph, pw) order -> NHWC
    return out.reshape(n, ph, pw, cout)


def linear(x, w_packed, b):
    """x:(M,K) @ w_packed:(Kp,F) bf16 + b -> (M,F) f32, K-tiled with a f32 VMEM acc."""
    m, k = x.shape
    kp, f = w_packed.shape
    mp = _round_up(m, 8)
    x = jnp.pad(x.astype(jnp.bfloat16), ((0, mp - m), (0, kp - k)))

    tk = _pick_k_tile(kp, cap=13824)      # whole K at the test size; <=4 steps at fc_in=55296
    nk = kp // tk

    out = pl.pallas_call(
        _fc_kernel,
        out_shape=jax.ShapeDtypeStruct((mp, f), jnp.float32),
        grid=(nk,),
        in_specs=[pl.BlockSpec((mp, tk), lambda j: (0, j)),
                  pl.BlockSpec((tk, f), lambda j: (j, 0)),
                  pl.BlockSpec((1, f), lambda j: (0, 0))],
        out_specs=pl.BlockSpec((mp, f), lambda j: (0, 0)),
        scratch_shapes=[pltpu.VMEM((mp, f), jnp.float32)],
        compiler_params=pltpu.CompilerParams(dimension_semantics=("arbitrary",)),
    )(x, w_packed, b)
    return out[:m]


# ---------------------------------------------------------------------------
# Forward pass (matches Complex2vec.forward)
# ---------------------------------------------------------------------------
def complex2vec_forward(x_nchw, packed):
    n, _, h, w = x_nchw.shape
    assert h % 16 == 0 and w % 16 == 0, "Complex2vec kernels require H, W % 16 == 0"
    # Guard against running with a spatial size different from packing time
    # (the fc row permutation is baked in offline).
    c2 = packed["w2t"].shape[1] // 4
    expected_fc_in = c2 * (h // 16) * (w // 16)
    kp = packed["wf"].shape[0]
    assert expected_fc_in <= kp < expected_fc_in + 128, \
        "fc weight was packed for a different input spatial size"

    x = jnp.transpose(x_nchw, (0, 2, 3, 1)).astype(jnp.bfloat16)   # NCHW -> NHWC, bf16 once
    x = conv_relu_pool(x, packed["w1t"], packed["w1b"], packed["b1"])   # fused stage 1 (bf16 out)
    x = conv_relu_pool(x, packed["w2t"], packed["w2b"], packed["b2"])   # fused stage 2 (bf16 out)
    feat = x.reshape(n, -1)                                # NHWC flatten; fc rows pre-permuted
    return linear(feat, packed["wf"], packed["bf"])


# ---------------------------------------------------------------------------
# pure-JAX float32 reference (for a bf16-tolerance correctness check)
# ---------------------------------------------------------------------------
def _reference_forward(x_nchw, params):
    def conv(x, w, b):
        y = jax.lax.conv_general_dilated(
            x, w, window_strides=(2, 2), padding=((2, 2), (2, 2)),
            dimension_numbers=("NCHW", "OIHW", "NCHW"))
        return jax.nn.relu(y + b[None, :, None, None])

    def pool(x):
        return jax.lax.reduce_window(x, -jnp.inf, jax.lax.max,
                                     (1, 1, 2, 2), (1, 1, 2, 2), "VALID")

    x = pool(conv(x_nchw, params["w1"], params["b1"]))
    x = pool(conv(x, params["w2"], params["b2"]))
    feat = x.reshape(x.shape[0], -1)
    return feat @ params["wf"].T + params["bf"]


if __name__ == "__main__":
    key = jax.random.PRNGKey(0)
    k = jax.random.split(key, 7)

    N, Cin, H, W = 2, 4, 64, 64
    num_features = 32
    # TODO(synk): original module hardcodes fc in_features=55296 (implies 768x576 inputs);
    # here fc_in is derived from the small test spatial size: 32 * (H//16) * (W//16).
    fc_in = 32 * (H // 16) * (W // 16)

    params = {
        "w1": 0.1 * jax.random.normal(k[0], (16, Cin, 5, 5), jnp.float32),
        "b1": 0.1 * jax.random.normal(k[1], (16,), jnp.float32),
        "w2": 0.1 * jax.random.normal(k[2], (32, 16, 5, 5), jnp.float32),
        "b2": 0.1 * jax.random.normal(k[3], (32,), jnp.float32),
        "wf": 0.05 * jax.random.normal(k[4], (num_features, fc_in), jnp.float32),
        "bf": 0.05 * jax.random.normal(k[5], (num_features,), jnp.float32),
    }
    x = jax.random.normal(k[6], (N, Cin, H, W), jnp.float32)

    packed = prepare_params(params, (H, W))        # offline weight packing
    fwd = jax.jit(complex2vec_forward)
    out = jax.block_until_ready(fwd(x, packed))

    assert out.shape == (N, num_features)
    assert bool(jnp.all(jnp.isfinite(out)))

    # bf16-matmul tolerance check against the float32 reference.
    ref = _reference_forward(x, params)
    max_err = float(jnp.max(jnp.abs(out - ref)))
    scale = float(jnp.max(jnp.abs(ref)))
    assert max_err <= 0.05 * scale + 0.25, (max_err, scale)

    print("KERNEL_OK")
</pallas_src>

<mosaic_0001>
module attributes {stable_mosaic.version = 11 : i64} {
  func.func @kernel(%arg0: i32, %arg1: memref<1x272x128xbf16, #tpu.memory_space<vmem>>, %arg2: memref<128x64xbf16, #tpu.memory_space<vmem>>, %arg3: memref<128x64xbf16, #tpu.memory_space<vmem>>, %arg4: memref<1x16xf32, #tpu.memory_space<vmem>>, %arg5: memref<1x256x16xbf16, #tpu.memory_space<vmem>>) attributes {dimension_semantics = [#tpu.dimension_semantics<parallel>], iteration_bounds = array<i64: 2>, scalar_prefetch = 0 : i64, scratch_operands = 0 : i64, tpu.core_type = #tpu.core_type<tc>, window_params = [{transform_indices = @transform_0, window_bounds = array<i64: 1, 272, 128>}, {pipeline_mode = #tpu.pipeline_mode<synchronous>, transform_indices = @transform_1, window_bounds = array<i64: 128, 64>}, {pipeline_mode = #tpu.pipeline_mode<synchronous>, transform_indices = @transform_2, window_bounds = array<i64: 128, 64>}, {pipeline_mode = #tpu.pipeline_mode<synchronous>, transform_indices = @transform_3, window_bounds = array<i64: 1, 16>}, {transform_indices = @transform_4, window_bounds = array<i64: 1, 256, 16>}]} {
    %c0 = arith.constant 0 : index
    %c0_0 = arith.constant 0 : index
    %c0_1 = arith.constant 0 : index
    %0 = vector.load %arg1[%c0, %c0_0, %c0_1] : memref<1x272x128xbf16, #tpu.memory_space<vmem>>, vector<1x256x128xbf16>
    %1 = vector.shape_cast %0 : vector<1x256x128xbf16> to vector<256x128xbf16>
    %c0_2 = arith.constant 0 : index
    %c16 = arith.constant 16 : index
    %c0_3 = arith.constant 0 : index
    %2 = vector.load %arg1[%c0_2, %c16, %c0_3] : memref<1x272x128xbf16, #tpu.memory_space<vmem>>, vector<1x256x128xbf16>
    %3 = vector.shape_cast %2 : vector<1x256x128xbf16> to vector<256x128xbf16>
    %c0_4 = arith.constant 0 : index
    %c0_5 = arith.constant 0 : index
    %4 = vector.load %arg2[%c0_4, %c0_5] : memref<128x64xbf16, #tpu.memory_space<vmem>>, vector<128x64xbf16>
    %cst = arith.constant dense<0.000000e+00> : vector<256x64xf32>
    %5 = tpu.matmul %1, %4, %cst {dimension_numbers = #tpu.dot_dimension_numbers<[1], [0], [0], [1], [0, 0, 1, 1], [], []>} : vector<256x128xbf16>, vector<128x64xbf16>, vector<256x64xf32> -> vector<256x64xf32>
    %c0_6 = arith.constant 0 : index
    %c0_7 = arith.constant 0 : index
    %6 = vector.load %arg3[%c0_6, %c0_7] : memref<128x64xbf16, #tpu.memory_space<vmem>>, vector<128x64xbf16>
    %cst_8 = arith.constant dense<0.000000e+00> : vector<256x64xf32>
    %7 = tpu.matmul %3, %6, %cst_8 {dimension_numbers = #tpu.dot_dimension_numbers<[1], [0], [0], [1], [0, 0, 1, 1], [], []>} : vector<256x128xbf16>, vector<128x64xbf16>, vector<256x64xf32> -> vector<256x64xf32>
    %8 = arith.addf %5, %7 : vector<256x64xf32>
    %9 = vector.extract_strided_slice %8 {offsets = [0, 0], sizes = [256, 16], strides = [1, 1]} : vector<256x64xf32> to vector<256x16xf32>
    %10 = vector.extract_strided_slice %8 {offsets = [0, 16], sizes = [256, 16], strides = [1, 1]} : vector<256x64xf32> to vector<256x16xf32>
    %11 = arith.maximumf %9, %10 : vector<256x16xf32>
    %12 = vector.extract_strided_slice %8 {offsets = [0, 32], sizes = [256, 16], strides = [1, 1]} : vector<256x64xf32> to vector<256x16xf32>
    %13 = vector.extract_strided_slice %8 {offsets = [0, 48], sizes = [256, 16], strides = [1, 1]} : vector<256x64xf32> to vector<256x16xf32>
    %14 = arith.maximumf %12, %13 : vector<256x16xf32>
    %15 = arith.maximumf %11, %14 : vector<256x16xf32>
    %c0_9 = arith.constant 0 : index
    %c0_10 = arith.constant 0 : index
    %16 = vector.load %arg4[%c0_9, %c0_10] : memref<1x16xf32, #tpu.memory_space<vmem>>, vector<1x16xf32>
    %17 = vector.broadcast %16 : vector<1x16xf32> to vector<256x16xf32>
    %18 = arith.addf %15, %17 : vector<256x16xf32>
    %cst_11 = arith.constant 0.000000e+00 : f32
    %19 = vector.broadcast %cst_11 : f32 to vector<256x16xf32>
    %20 = arith.maximumf %18, %19 : vector<256x16xf32>
    %21 = arith.truncf %20 : vector<256x16xf32> to vector<256x16xbf16>
    %c0_12 = arith.constant 0 : index
    %c0_13 = arith.constant 0 : index
    %c0_14 = arith.constant 0 : index
    %22 = vector.load %arg5[%c0_12, %c0_13, %c0_14] : memref<1x256x16xbf16, #tpu.memory_space<vmem>>, vector<1x256x16xbf16>
    %23 = vector.shape_cast %22 : vector<1x256x16xbf16> to vector<256x16xbf16>
    %24 = vector.shape_cast %21 : vector<256x16xbf16> to vector<1x256x16xbf16>
    tpu.vector_store %arg5[%c0_12, %c0_13, %c0_14], %24 {strides = array<i32>} : memref<1x256x16xbf16, #tpu.memory_space<vmem>>, vector<1x256x16xbf16>,
    return
  }
  func.func @transform_0(%arg0: i32) -> (i32, i32, i32) {
    %c0_i32 = arith.constant 0 : i32
    %c0_i32_0 = arith.constant 0 : i32
    %c0_i32_1 = arith.constant 0 : i32
    return %arg0, %c0_i32, %c0_i32_0 : i32, i32, i32
  }
  func.func @transform_1(%arg0: i32) -> (i32, i32) {
    %c0_i32 = arith.constant 0 : i32
    %c0_i32_0 = arith.constant 0 : i32
    %c0_i32_1 = arith.constant 0 : i32
    return %c0_i32, %c0_i32_0 : i32, i32
  }
  func.func @transform_2(%arg0: i32) -> (i32, i32) {
    %c0_i32 = arith.constant 0 : i32
    %c0_i32_0 = arith.constant 0 : i32
    %c0_i32_1 = arith.constant 0 : i32
    return %c0_i32, %c0_i32_0 : i32, i32
  }
  func.func @transform_3(%arg0: i32) -> (i32, i32) {
    %c0_i32 = arith.constant 0 : i32
    %c0_i32_0 = arith.constant 0 : i32
    %c0_i32_1 = arith.constant 0 : i32
    return %c0_i32, %c0_i32_0 : i32, i32
  }
  func.func @transform_4(%arg0: i32) -> (i32, i32, i32) {
    %c0_i32 = arith.constant 0 : i32
    %c0_i32_0 = arith.constant 0 : i32
    %c0_i32_1 = arith.constant 0 : i32
    return %arg0, %c0_i32, %c0_i32_0 : i32, i32, i32
  }
}

module attributes {stable_mosaic.version = 11 : i64} {
  func.func @kernel(%arg0: i32, %arg1: memref<1x20x512xbf16, #tpu.memory_space<vmem>>, %arg2: memref<512x128xbf16, #tpu.memory_space<vmem>>, %arg3: memref<512x128xbf16, #tpu.memory_space<vmem>>, %arg4: memref<1x32xf32, #tpu.memory_space<vmem>>, %arg5: memref<1x16x32xbf16, #tpu.memory_space<vmem>>) attributes {dimension_semantics = [#tpu.dimension_semantics<parallel>], iteration_bounds = array<i64: 2>, scalar_prefetch = 0 : i64, scratch_operands = 0 : i64, tpu.core_type = #tpu.core_type<tc>, window_params = [{transform_indices = @transform_0, window_bounds = array<i64: 1, 20, 512>}, {pipeline_mode = #tpu.pipeline_mode<synchronous>, transform_indices = @transform_1, window_bounds = array<i64: 512, 128>}, {pipeline_mode = #tpu.pipeline_mode<synchronous>, transform_indices = @transform_2, window_bounds = array<i64: 512, 128>}, {pipeline_mode = #tpu.pipeline_mode<synchronous>, transform_indices = @transform_3, window_bounds = array<i64: 1, 32>}, {transform_indices = @transform_4, window_bounds = array<i64: 1, 16, 32>}]} {
    %c0 = arith.constant 0 : index
    %c0_0 = arith.constant 0 : index
    %c0_1 = arith.constant 0 : index
    %0 = vector.load %arg1[%c0, %c0_0, %c0_1] : memref<1x20x512xbf16, #tpu.memory_space<vmem>>, vector<1x16x512xbf16>
    %1 = vector.shape_cast %0 : vector<1x16x512xbf16> to vector<16x512xbf16>
    %c0_2 = arith.constant 0 : index
    %c4 = arith.constant 4 : index
    %c0_3 = arith.constant 0 : index
    %2 = vector.load %arg1[%c0_2, %c4, %c0_3] : memref<1x20x512xbf16, #tpu.memory_space<vmem>>, vector<1x16x512xbf16>
    %3 = vector.shape_cast %2 : vector<1x16x512xbf16> to vector<16x512xbf16>
    %c0_4 = arith.constant 0 : index
    %c0_5 = arith.constant 0 : index
    %4 = vector.load %arg2[%c0_4, %c0_5] : memref<512x128xbf16, #tpu.memory_space<vmem>>, vector<512x128xbf16>
    %cst = arith.constant dense<0.000000e+00> : vector<16x128xf32>
    %5 = tpu.matmul %1, %4, %cst {dimension_numbers = #tpu.dot_dimension_numbers<[1], [0], [0], [1], [0, 0, 1, 1], [], []>} : vector<16x512xbf16>, vector<512x128xbf16>, vector<16x128xf32> -> vector<16x128xf32>
    %c0_6 = arith.constant 0 : index
    %c0_7 = arith.constant 0 : index
    %6 = vector.load %arg3[%c0_6, %c0_7] : memref<512x128xbf16, #tpu.memory_space<vmem>>, vector<512x128xbf16>
    %cst_8 = arith.constant dense<0.000000e+00> : vector<16x128xf32>
    %7 = tpu.matmul %3, %6, %cst_8 {dimension_numbers = #tpu.dot_dimension_numbers<[1], [0], [0], [1], [0, 0, 1, 1], [], []>} : vector<16x512xbf16>, vector<512x128xbf16>, vector<16x128xf32> -> vector<16x128xf32>
    %8 = arith.addf %5, %7 : vector<16x128xf32>
    %9 = vector.extract_strided_slice %8 {offsets = [0, 0], sizes = [16, 32], strides = [1, 1]} : vector<16x128xf32> to vector<16x32xf32>
    %10 = vector.extract_strided_slice %8 {offsets = [0, 32], sizes = [16, 32], strides = [1, 1]} : vector<16x128xf32> to vector<16x32xf32>
    %11 = arith.maximumf %9, %10 : vector<16x32xf32>
    %12 = vector.extract_strided_slice %8 {offsets = [0, 64], sizes = [16, 32], strides = [1, 1]} : vector<16x128xf32> to vector<16x32xf32>
    %13 = vector.extract_strided_slice %8 {offsets = [0, 96], sizes = [16, 32], strides = [1, 1]} : vector<16x128xf32> to vector<16x32xf32>
    %14 = arith.maximumf %12, %13 : vector<16x32xf32>
    %15 = arith.maximumf %11, %14 : vector<16x32xf32>
    %c0_9 = arith.constant 0 : index
    %c0_10 = arith.constant 0 : index
    %16 = vector.load %arg4[%c0_9, %c0_10] : memref<1x32xf32, #tpu.memory_space<vmem>>, vector<1x32xf32>
    %17 = vector.broadcast %16 : vector<1x32xf32> to vector<16x32xf32>
    %18 = arith.addf %15, %17 : vector<16x32xf32>
    %cst_11 = arith.constant 0.000000e+00 : f32
    %19 = vector.broadcast %cst_11 : f32 to vector<16x32xf32>
    %20 = arith.maximumf %18, %19 : vector<16x32xf32>
    %21 = arith.truncf %20 : vector<16x32xf32> to vector<16x32xbf16>
    %c0_12 = arith.constant 0 : index
    %c0_13 = arith.constant 0 : index
    %c0_14 = arith.constant 0 : index
    %22 = vector.load %arg5[%c0_12, %c0_13, %c0_14] : memref<1x16x32xbf16, #tpu.memory_space<vmem>>, vector<1x16x32xbf16>
    %23 = vector.shape_cast %22 : vector<1x16x32xbf16> to vector<16x32xbf16>
    %24 = vector.shape_cast %21 : vector<16x32xbf16> to vector<1x16x32xbf16>
    tpu.vector_store %arg5[%c0_12, %c0_13, %c0_14], %24 {strides = array<i32>} : memref<1x16x32xbf16, #tpu.memory_space<vmem>>, vector<1x16x32xbf16>,
    return
  }
  func.func @transform_0(%arg0: i32) -> (i32, i32, i32) {
    %c0_i32 = arith.constant 0 : i32
    %c0_i32_0 = arith.constant 0 : i32
    %c0_i32_1 = arith.constant 0 : i32
    return %arg0, %c0_i32, %c0_i32_0 : i32, i32, i32
  }
  func.func @transform_1(%arg0: i32) -> (i32, i32) {
    %c0_i32 = arith.constant 0 : i32
    %c0_i32_0 = arith.constant 0 : i32
    %c0_i32_1 = arith.constant 0 : i32
    return %c0_i32, %c0_i32_0 : i32, i32
  }
  func.func @transform_2(%arg0: i32) -> (i32, i32) {
    %c0_i32 = arith.constant 0 : i32
    %c0_i32_0 = arith.constant 0 : i32
    %c0_i32_1 = arith.constant 0 : i32
    return %c0_i32, %c0_i32_0 : i32, i32
  }
  func.func @transform_3(%arg0: i32) -> (i32, i32) {
    %c0_i32 = arith.constant 0 : i32
    %c0_i32_0 = arith.constant 0 : i32
    %c0_i32_1 = arith.constant 0 : i32
    return %c0_i32, %c0_i32_0 : i32, i32
  }
  func.func @transform_4(%arg0: i32) -> (i32, i32, i32) {
    %c0_i32 = arith.constant 0 : i32
    %c0_i32_0 = arith.constant 0 : i32
    %c0_i32_1 = arith.constant 0 : i32
    return %arg0, %c0_i32, %c0_i32_0 : i32, i32, i32
  }
}

module attributes {stable_mosaic.version = 11 : i64} {
  func.func @_fc_kernel(%arg0: i32, %arg1: memref<8x512xbf16, #tpu.memory_space<vmem>>, %arg2: memref<512x32xbf16, #tpu.memory_space<vmem>>, %arg3: memref<1x32xf32, #tpu.memory_space<vmem>>, %arg4: memref<8x32xf32, #tpu.memory_space<vmem>>, %arg5: memref<8x32xf32, #tpu.memory_space<vmem>>) attributes {dimension_semantics = [#tpu.dimension_semantics<arbitrary>], iteration_bounds = array<i64: 1>, scalar_prefetch = 0 : i64, scratch_operands = 1 : i64, tpu.core_type = #tpu.core_type<tc>, window_params = [{transform_indices = @transform_0, window_bounds = array<i64: 8, 512>}, {transform_indices = @transform_1, window_bounds = array<i64: 512, 32>}, {pipeline_mode = #tpu.pipeline_mode<synchronous>, transform_indices = @transform_2, window_bounds = array<i64: 1, 32>}, {pipeline_mode = #tpu.pipeline_mode<synchronous>, transform_indices = @transform_3, window_bounds = array<i64: 8, 32>}]} {
    %c0_i32 = arith.constant 0 : i32
    %0 = arith.cmpi eq, %arg0, %c0_i32 : i32
    %1 = arith.extui %0 : i1 to i32
    %c0_i32_0 = arith.constant 0 : i32
    %2 = arith.cmpi ne, %1, %c0_i32_0 : i32
    scf.if %2 {
      %cst_10 = arith.constant 0.000000e+00 : f32
      %12 = vector.broadcast %cst_10 : f32 to vector<8x32xf32>
      %c0_11 = arith.constant 0 : index
      %c0_12 = arith.constant 0 : index
      %13 = vector.load %arg5[%c0_11, %c0_12] : memref<8x32xf32, #tpu.memory_space<vmem>>, vector<8x32xf32>
      tpu.vector_store %arg5[%c0_11, %c0_12], %12 {strides = array<i32>} : memref<8x32xf32, #tpu.memory_space<vmem>>, vector<8x32xf32>,
    } else {
    }
    %c0 = arith.constant 0 : index
    %c0_1 = arith.constant 0 : index
    %3 = vector.load %arg5[%c0, %c0_1] : memref<8x32xf32, #tpu.memory_space<vmem>>, vector<8x32xf32>
    %c0_2 = arith.constant 0 : index
    %c0_3 = arith.constant 0 : index
    %4 = vector.load %arg1[%c0_2, %c0_3] : memref<8x512xbf16, #tpu.memory_space<vmem>>, vector<8x512xbf16>
    %c0_4 = arith.constant 0 : index
    %c0_5 = arith.constant 0 : index
    %5 = vector.load %arg2[%c0_4, %c0_5] : memref<512x32xbf16, #tpu.memory_space<vmem>>, vector<512x32xbf16>
    %cst = arith.constant dense<0.000000e+00> : vector<8x32xf32>
    %6 = tpu.matmul %4, %5, %cst {dimension_numbers = #tpu.dot_dimension_numbers<[1], [0], [0], [1], [0, 0, 1, 1], [], []>} : vector<8x512xbf16>, vector<512x32xbf16>, vector<8x32xf32> -> vector<8x32xf32>
    %7 = arith.addf %3, %6 : vector<8x32xf32>
    %c0_6 = arith.constant 0 : index
    %c0_7 = arith.constant 0 : index
    %8 = vector.load %arg5[%c0_6, %c0_7] : memref<8x32xf32, #tpu.memory_space<vmem>>, vector<8x32xf32>
    tpu.vector_store %arg5[%c0_6, %c0_7], %7 {strides = array<i32>} : memref<8x32xf32, #tpu.memory_space<vmem>>, vector<8x32xf32>,
    %c0_i32_8 = arith.constant 0 : i32
    %9 = arith.cmpi eq, %arg0, %c0_i32_8 : i32
    %10 = arith.extui %9 : i1 to i32
    %c0_i32_9 = arith.constant 0 : i32
    %11 = arith.cmpi ne, %10, %c0_i32_9 : i32
    scf.if %11 {
      %c0_10 = arith.constant 0 : index
      %c0_11 = arith.constant 0 : index
      %12 = vector.load %arg5[%c0_10, %c0_11] : memref<8x32xf32, #tpu.memory_space<vmem>>, vector<8x32xf32>
      %c0_12 = arith.constant 0 : index
      %c0_13 = arith.constant 0 : index
      %13 = vector.load %arg3[%c0_12, %c0_13] : memref<1x32xf32, #tpu.memory_space<vmem>>, vector<1x32xf32>
      %14 = vector.broadcast %13 : vector<1x32xf32> to vector<8x32xf32>
      %15 = arith.addf %12, %14 : vector<8x32xf32>
      %c0_14 = arith.constant 0 : index
      %c0_15 = arith.constant 0 : index
      %16 = vector.load %arg4[%c0_14, %c0_15] : memref<8x32xf32, #tpu.memory_space<vmem>>, vector<8x32xf32>
      tpu.vector_store %arg4[%c0_14, %c0_15], %15 {strides = array<i32>} : memref<8x32xf32, #tpu.memory_space<vmem>>, vector<8x32xf32>,
    } else {
    }
    return
  }
  func.func @transform_0(%arg0: i32) -> (i32, i32) {
    %c0_i32 = arith.constant 0 : i32
    %c0_i32_0 = arith.constant 0 : i32
    return %c0_i32, %arg0 : i32, i32
  }
  func.func @transform_1(%arg0: i32) -> (i32, i32) {
    %c0_i32 = arith.constant 0 : i32
    %c0_i32_0 = arith.constant 0 : i32
    return %arg0, %c0_i32 : i32, i32
  }
  func.func @transform_2(%arg0: i32) -> (i32, i32) {
    %c0_i32 = arith.constant 0 : i32
    %c0_i32_0 = arith.constant 0 : i32
    %c0_i32_1 = arith.constant 0 : i32
    return %c0_i32, %c0_i32_0 : i32, i32
  }
  func.func @transform_3(%arg0: i32) -> (i32, i32) {
    %c0_i32 = arith.constant 0 : i32
    %c0_i32_0 = arith.constant 0 : i32
    %c0_i32_1 = arith.constant 0 : i32
    return %c0_i32, %c0_i32_0 : i32, i32
  }
}

</mosaic_0001>

<bundles_post_ra>
// kernel: complex2vec_forward.3
= control target key start
LH: loop header
LB: loop body
LE: loop exit
PB: predicated region body
PF: predicated region fallthrough
CT: control target
= control target key end

     0   :  { %s1906_s15 = smov 0   ;;  %s2432_s0 = inlined_call_operand.vmem [shape: bf16[2,272,128], index: 0, kind: input, shape index: {}]   ;;  %s2433_s1 = inlined_call_operand.vmem [shape: bf16[128,64], index: 1, kind: input, shape index: {}]   ;;  %s2434_s2 = inlined_call_operand.vmem [shape: bf16[128,64], index: 2, kind: input, shape index: {}]   ;;  %s2435_s3 = inlined_call_operand.vmem [shape: f32[1,16], index: 3, kind: input, shape index: {}]   ;;  %s2436_s4 = inlined_call_operand.vmem [shape: bf16[2,256,16], index: 4, kind: output, shape index: {}]  }
   0x1 LB: > { %s1512_s16 = sadd.s32 4294967295, %s1877_s15   ;;  %p1516_p0 = scmp.ge.s32.totalorder %s1877_s15, 1  ;;  %s1877_s15 = sphi %s1906_s15, %s14_s15  }
   0x2   : > { %p162_p1 = scmp.lt.s32.totalorder %s1877_s15, 3 }
   0x4   : > { %p163_p2 = pnand %p1516_p0, %p162_p1 }
   0x5   : > { %v1823_v0 = vld [vmem:[%s2434_s2] sm:$0xff] (!%p163_p2)   ;;  %p188_p3 = scmp.lt.s32.totalorder (!%p163_p2), %s1512_s16, 1  ;;  %v1825_v2 = vld [vmem:[%s2434_s2 + $0x8] sm:$0xff] (!%p163_p2)   ;;  %v1827_v4 = vld [vmem:[%s2434_s2 + $0x10] sm:$0xff] (!%p163_p2)   ;;  %s1879_s29 = smov (!%p163_p2), 112   ;;  %vm1424_vm0 = vcmask (!%p163_p2), 125952  }
   0x6   : > { %166 = sbr.rel (%p163_p2) target bundleno = 560 (0x230), region = 36  ;;  %v1824_v1 = vld [vmem:[%s2433_s1] sm:$0xff] (!%p163_p2)   ;;  %1684 = vmatprep.subr.bf16.mxu1 (!%p163_p2), %v1823_v0  ;;  %v1826_v3 = vld [vmem:[%s2433_s1 + $0x8] sm:$0xff] (!%p163_p2)   ;;  %v1828_v5 = vld [vmem:[%s2433_s1 + $0x10] sm:$0xff] (!%p163_p2)   ;;  %s1880_s30 = smov (!%p163_p2), 96  }
   0x7   : > { %1732 = vmatprep.subr.bf16.mxu0 (!%p163_p2), %v1824_v1  ;;  %1685 = vmatpush3.bf16.msra.mxu1 (!%p163_p2), %v1823_v0  ;;  %v1829_v6 = vld [vmem:[%s2434_s2 + $0x18] sm:$0xff] (!%p163_p2)   ;;  %v1831_v8 = vld [vmem:[%s2434_s2 + $0x20] sm:$0xff] (!%p163_p2)   ;;  %v1833_v10 = vld [vmem:[%s2434_s2 + $0x28] sm:$0xff] (!%p163_p2)  }
   0x8   : > { %1733 = vmatpush3.bf16.msra.mxu0 (!%p163_p2), %v1824_v1  ;;  %1686 = vmatprep.subr.bf16.mxu1 (!%p163_p2), %v1825_v2  ;;  %v1830_v7 = vld [vmem:[%s2433_s1 + $0x18] sm:$0xff] (!%p163_p2)   ;;  %v1832_v9 = vld [vmem:[%s2433_s1 + $0x20] sm:$0xff] (!%p163_p2)   ;;  %v1834_v11 = vld [vmem:[%s2433_s1 + $0x28] sm:$0xff] (!%p163_p2)  }
   0x9   : > { %1734 = vmatprep.subr.bf16.mxu0 (!%p163_p2), %v1826_v3  ;;  %v1835_v14 = vld [vmem:[%s2434_s2 + $0x30] sm:$0xff] (!%p163_p2)   ;;  %v1837_v16 = vld [vmem:[%s2434_s2 + $0x38] sm:$0xff] (!%p163_p2)  }
   0xa   : > { %v1836_v15 = vld [vmem:[%s2433_s1 + $0x30] sm:$0xff] (!%p163_p2)   ;;  %v1838_v17 = vld [vmem:[%s2433_s1 + $0x38] sm:$0xff] (!%p163_p2)  }
   0xb   : > { %1687 = vmatpush3.bf16.msra.mxu1 (!%p163_p2), %v1825_v2 }
   0xc   : > { %1735 = vmatpush3.bf16.msra.mxu0 (!%p163_p2), %v1826_v3  ;;  %1688 = vmatprep.subr.bf16.mxu1 (!%p163_p2), %v1827_v4 }
   0xd   : > { %s2438_s16 = smov (!%p188_p3, %s1512_s16), 1  ;;  %1736 = vmatprep.subr.bf16.mxu0 %v1828_v5 }
   0xe   : > { %s1812_s7 = smul.u32 136, %s2438_s16 }
   0xf   : > { %1689 = vmatpush3.bf16.msra.mxu1 %v1827_v4 }
  0x10   : > { %1737 = vmatpush3.bf16.msra.mxu0 %v1828_v5  ;;  %1690 = vmatprep.subr.bf16.mxu1 %v1829_v6  ;;  %s1950_s14 = scalar_lea.vmem %s2432_s0, %s1812_s7  ;;  %s1603_s7 = sshll.u32 %s2438_s16, 7 }
  0x11   : > { %1738 = vmatprep.subr.bf16.mxu0 %v1830_v7  ;;  %v1839_v12 = vld [vmem:[%s1950_s14 + $0x8] sm:$0xff]   ;;  %v1840_v13 = vld [vmem:[%s1950_s14] sm:$0xff]   ;;  %v1841_v18 = vld [vmem:[%s1950_s14 + $0x10] sm:$0xff]   ;;  %s2303_s10 = scalar_lea.vmem %s2436_s4, %s1603_s7 }
  0x12   : > { %1700 = vmatprep.mubr.bf16.mxu1 %v1839_v12  ;;  %1748 = vmatprep.mubr.bf16.mxu0 %v1840_v13  ;;  %v1842_v19 = vld [vmem:[%s1950_s14 + $0x8] sm:$0xff]   ;;  %v1843_v20 = vld [vmem:[%s1950_s14 + $0x18] sm:$0xff]   ;;  %v1844_v21 = vld [vmem:[%s1950_s14 + $0x10] sm:$0xff]  }
  0x13   : > { %1691 = vmatpush3.bf16.msra.mxu1 %v1829_v6  ;;  %v1845_v22 = vld [vmem:[%s1950_s14 + $0x20] sm:$0xff]   ;;  %v1846_v23 = vld [vmem:[%s1950_s14 + $0x18] sm:$0xff]   ;;  %v1847_v24 = vld [vmem:[%s1950_s14 + $0x28] sm:$0xff]  }
  0x14   : > { %1739 = vmatpush3.bf16.msra.mxu0 %v1830_v7  ;;  %1692 = vmatprep.subr.bf16.mxu1 %v1831_v8  ;;  %v1848_v25 = vld [vmem:[%s1950_s14 + $0x20] sm:$0xff]   ;;  %v1849_v26 = vld [vmem:[%s1950_s14 + $0x30] sm:$0xff]   ;;  %v1850_v27 = vld [vmem:[%s1950_s14 + $0x28] sm:$0xff]  }
  0x15   : > { %1740 = vmatprep.subr.bf16.mxu0 %v1832_v9  ;;  %v1851_v28 = vld [vmem:[%s1950_s14 + $0x38] sm:$0xff]   ;;  %v1852_v29 = vld [vmem:[%s1950_s14 + $0x30] sm:$0xff]   ;;  %v1853_v30 = vld [vmem:[%s1950_s14 + $0x40] sm:$0xff]  }
  0x16   : > { %v1854_v31 = vld [vmem:[%s1950_s14 + $0x38] sm:$0xff]   ;;  %v1855_v32 = vld [vmem:[%s1950_s14 + $0x48] sm:$0xff]   ;;  %v1856_v33 = vld [vmem:[%s1950_s14 + $0x40] sm:$0xff]  }
  0x17   : > { %1693 = vmatpush3.bf16.msra.mxu1 %v1831_v8  ;;  %v1857_v34 = vld [vmem:[%s1950_s14 + $0x50] sm:$0xff]   ;;  %v1858_v35 = vld [vmem:[%s1950_s14 + $0x48] sm:$0xff]   ;;  %v1859_v36 = vld [vmem:[%s1950_s14 + $0x58] sm:$0xff]  }
  0x18   : > { %1741 = vmatpush3.bf16.msra.mxu0 %v1832_v9  ;;  %1694 = vmatprep.subr.bf16.mxu1 %v1833_v10  ;;  %v1860_v37 = vld [vmem:[%s1950_s14 + $0x50] sm:$0xff]   ;;  %v1861_v38 = vld [vmem:[%s1950_s14 + $0x60] sm:$0xff]   ;;  %v1862_v39 = vld [vmem:[%s1950_s14 + $0x58] sm:$0xff]  }
  0x19   : > { %1742 = vmatprep.subr.bf16.mxu0 %v1834_v11  ;;  %v1863_v40 = vld [vmem:[%s1950_s14 + $0x68] sm:$0xff]   ;;  %v1864_v41 = vld [vmem:[%s1950_s14 + $0x60] sm:$0xff]   ;;  %v1865_v42 = vld [vmem:[%s1950_s14 + $0x70] sm:$0xff]  }
  0x1a   : > { %v1866_v43 = vld [vmem:[%s1950_s14 + $0x68] sm:$0xff]   ;;  %v1867_v44 = vld [vmem:[%s1950_s14 + $0x78] sm:$0xff]   ;;  %v1868_v45 = vld [vmem:[%s1950_s14 + $0x70] sm:$0xff]  }
  0x1b   : > { %1695 = vmatpush3.bf16.msra.mxu1 %v1833_v10  ;;  %v1869_v46 = vld [vmem:[%s1950_s14 + $0x80] sm:$0xff]   ;;  %v1870_v47 = vld [vmem:[%s1950_s14 + $0x78] sm:$0xff]  }
  0x1c   : > { %1743 = vmatpush3.bf16.msra.mxu0 %v1834_v11  ;;  %1696 = vmatprep.subr.bf16.mxu1 %v1835_v14 }
  0x1d   : > { %1744 = vmatprep.subr.bf16.mxu0 %v1836_v15 }
  0x1f   : > { %1697 = vmatpush3.bf16.msra.mxu1 %v1835_v14 }
  0x20   : > { %1745 = vmatpush3.bf16.msra.mxu0 %v1836_v15  ;;  %1698 = vmatprep.subr.bf16.mxu1 %v1837_v16 }
  0x21   : > { %1746 = vmatprep.subr.bf16.mxu0 %v1838_v17 }
  0x23   : > { %1699 = vmatpush3.bf16.msra.mxu1 %v1837_v16 }
  0x24   : > { %1747 = vmatpush3.bf16.msra.mxu0 %v1838_v17 }
  0x26   : > { %1701 = vmatmul.mubr.bf16.vlgmr.msra.gmra.mrb[0].mxu1 %v1841_v18 }
  0x27   : > { %1749 = vmatmul.mubr.bf16.vlgmr.msra.gmra.mrb[0].mxu0 %v1842_v19  ;;  %1704 = vmatprep.mubr.bf16.mxu1 %v1843_v20 }
  0x28   : > { %1752 = vmatprep.mubr.bf16.mxu0 %v1844_v21 }
  0x2e   : > { %1705 = vmatmul.mubr.bf16.gmra.mrb[4].mxu1 %v1845_v22 }
  0x2f   : > { %1753 = vmatmul.mubr.bf16.gmra.mrb[4].mxu0 %v1846_v23  ;;  %1708 = vmatprep.mubr.bf16.mxu1 %v1847_v24 }
  0x30   : > { %1756 = vmatprep.mubr.bf16.mxu0 %v1848_v25 }
  0x36   : > { %1709 = vmatmul.mubr.bf16.gmra.mrb[8].mxu1 %v1849_v26 }
  0x37   : > { %1757 = vmatmul.mubr.bf16.gmra.mrb[8].mxu0 %v1850_v27  ;;  %1712 = vmatprep.mubr.bf16.mxu1 %v1851_v28 }
  0x38   : > { %1760 = vmatprep.mubr.bf16.mxu0 %v1852_v29 }
  0x3e   : > { %1713 = vmatmul.mubr.bf16.gmra.mrb[12].mxu1 %v1853_v30 }
  0x3f   : > { %1761 = vmatmul.mubr.bf16.gmra.mrb[12].mxu0 %v1854_v31  ;;  %1716 = vmatprep.mubr.bf16.mxu1 %v1855_v32 }
  0x40   : > { %1764 = vmatprep.mubr.bf16.mxu0 %v1856_v33 }
  0x46   : > { %1717 = vmatmul.mubr.bf16.gmra.mrb[16].mxu1 %v1857_v34 }
  0x47   : > { %1765 = vmatmul.mubr.bf16.gmra.mrb[16].mxu0 %v1858_v35  ;;  %1720 = vmatprep.mubr.bf16.mxu1 %v1859_v36 }
  0x48   : > { %1768 = vmatprep.mubr.bf16.mxu0 %v1860_v37 }
  0x4e   : > { %1721 = vmatmul.mubr.bf16.gmra.mrb[20].mxu1 %v1861_v38 }
  0x4f   : > { %1769 = vmatmul.mubr.bf16.gmra.mrb[20].mxu0 %v1862_v39  ;;  %1724 = vmatprep.mubr.bf16.mxu1 %v1863_v40 }
  0x50   : > { %1772 = vmatprep.mubr.bf16.mxu0 %v1864_v41 }
  0x56   : > { %1725 = vmatmul.mubr.bf16.gmra.mrb[24].mxu1 %v1865_v42 }
  0x57   : > { %1773 = vmatmul.mubr.bf16.gmra.mrb[24].mxu0 %v1866_v43  ;;  %1728 = vmatprep.mubr.bf16.mxu1 %v1867_v44 }
  0x58   : > { %1776 = vmatprep.mubr.bf16.mxu0 %v1868_v45 }
  0x5e   : > { %1729 = vmatmul.mubr.bf16.gmra.mrb[28].mxu1 %v1869_v46 }
  0x5f   : > { %1777 = vmatmul.mubr.bf16.gmra.mrb[28].mxu0 %v1870_v47 }
  0xf9   : > { %v1702_v48 = vpop.f32.mrb[0].mxu1 }
  0xfa   : > { %v1750_v49 = vpop.f32.mrb[0].mxu0  ;;  %v473_v50 = vpop.f32.mrb[1].mxu1 }
  0xfb   : > { %v2002_v51 = vadd.f32 %v1750_v49, %v1702_v48  ;;  %v778_v52 = vpop.f32.mrb[1].mxu0  ;;  %v1703_v53 = vpop.f32.mrb[2].mxu1 }
  0xfc   : > { %v2004_v54 = vadd.f32 %v778_v52, %v473_v50  ;;  %v1751_v55 = vpop.f32.mrb[2].mxu0  ;;  %v476_v56 = vpop.f32.mrb[3].mxu1 }
  0xfd   : > { %v2006_v57 = vadd.f32 %v1751_v55, %v1703_v53  ;;  %941 = vrot.lane.b32.xlu1 %v2002_v51, %s1879_s29  ;;  %v781_v58 = vpop.f32.mrb[3].mxu0 }
  0xfe   : > { %v2010_v59 = vadd.f32 %v781_v58, %v476_v56  ;;  %937 = vrot.lane.b32.xlu0 %v2004_v54, %s1879_s29 }
 0x101   : > { %943 = vrot.lane.b32.xlu1 %v2006_v57, %s1879_s29  ;;  %v1706_v60 = vpop.f32.mrb[4].mxu1 }
 0x102   : > { %v1754_v61 = vpop.f32.mrb[4].mxu0  ;;  %939 = vrot.lane.b32.xlu0 %v2010_v59, %s1879_s29  ;;  %v489_v62 = vpop.f32.mrb[5].mxu1 }
 0x103   : > { %v2018_v63 = vadd.f32 %v1754_v61, %v1706_v60  ;;  %v794_v0 = vpop.f32.mrb[5].mxu0  ;;  %v1707_v1 = vpop.f32.mrb[6].mxu1 }
 0x104   : > { %v2020_v2 = vadd.f32 %v794_v0, %v489_v62  ;;  %v1755_v3 = vpop.f32.mrb[6].mxu0  ;;  %v492_v4 = vpop.f32.mrb[7].mxu1 }
 0x105   : > { %v2022_v5 = vadd.f32 %v1755_v3, %v1707_v1  ;;  %v797_v6 = vpop.f32.mrb[7].mxu0 }
 0x106   : > { %v2024_v7 = vadd.f32 %v797_v6, %v492_v4  ;;  %949 = vrot.lane.b32.xlu0 %v2018_v63, %s1879_s29 }
 0x107   : > { %951 = vrot.lane.b32.xlu1 %v2022_v5, %s1879_s29 }
 0x109   : > { %v1710_v8 = vpop.f32.mrb[8].mxu1 }
 0x10a   : > { %v1758_v9 = vpop.f32.mrb[8].mxu0  ;;  %945 = vrot.lane.b32.xlu0 %v2020_v2, %s1879_s29  ;;  %v505_v10 = vpop.f32.mrb[9].mxu1 }
 0x10b   : > { %v2032_v11 = vadd.f32 %v1758_v9, %v1710_v8  ;;  %v810_v12 = vpop.f32.mrb[9].mxu0  ;;  %947 = vrot.lane.b32.xlu1 %v2024_v7, %s1879_s29  ;;  %v1711_v13 = vpop.f32.mrb[10].mxu1 }
 0x10c   : > { %v2036_v14 = vadd.f32 %v810_v12, %v505_v10  ;;  %v1759_v15 = vpop.f32.mrb[10].mxu0  ;;  %v508_v16 = vpop.f32.mrb[11].mxu1 }
 0x10d   : > { %v2038_v17 = vadd.f32 %v1759_v15, %v1711_v13  ;;  %v813_v18 = vpop.f32.mrb[11].mxu0 }
 0x10e   : > { %v2040_v19 = vadd.f32 %v813_v18, %v508_v16  ;;  %957 = vrot.lane.b32.xlu0 %v2032_v11, %s1879_s29 }
 0x10f   : > { %959 = vrot.lane.b32.xlu1 %v2038_v17, %s1879_s29 }
 0x111   : > { %v1714_v20 = vpop.f32.mrb[12].mxu1 }
 0x112   : > { %v1762_v21 = vpop.f32.mrb[12].mxu0  ;;  %953 = vrot.lane.b32.xlu0 %v2036_v14, %s1879_s29  ;;  %v521_v22 = vpop.f32.mrb[13].mxu1 }
 0x113   : > { %v2048_v23 = vadd.f32 %v1762_v21, %v1714_v20  ;;  %v826_v24 = vpop.f32.mrb[13].mxu0  ;;  %955 = vrot.lane.b32.xlu1 %v2040_v19, %s1879_s29  ;;  %v1715_v25 = vpop.f32.mrb[14].mxu1 }
 0x114   : > { %v2052_v26 = vadd.f32 %v826_v24, %v521_v22  ;;  %v1763_v27 = vpop.f32.mrb[14].mxu0  ;;  %v524_v28 = vpop.f32.mrb[15].mxu1 }
 0x115   : > { %v2054_v29 = vadd.f32 %v1763_v27, %v1715_v25  ;;  %v829_v30 = vpop.f32.mrb[15].mxu0 }
 0x116   : > { %v2056_v31 = vadd.f32 %v829_v30, %v524_v28  ;;  %965 = vrot.lane.b32.xlu0 %v2048_v23, %s1879_s29 }
 0x117   : > { %967 = vrot.lane.b32.xlu1 %v2054_v29, %s1879_s29 }
 0x119   : > { %v1718_v32 = vpop.f32.mrb[16].mxu1 }
 0x11a   : > { %v1766_v33 = vpop.f32.mrb[16].mxu0  ;;  %961 = vrot.lane.b32.xlu0 %v2052_v26, %s1879_s29  ;;  %v537_v34 = vpop.f32.mrb[17].mxu1 }
 0x11b   : > { %v2064_v35 = vadd.f32 %v1766_v33, %v1718_v32  ;;  %v842_v36 = vpop.f32.mrb[17].mxu0  ;;  %963 = vrot.lane.b32.xlu1 %v2056_v31, %s1879_s29  ;;  %v1719_v37 = vpop.f32.mrb[18].mxu1 }
 0x11c   : > { %v2068_v38 = vadd.f32 %v842_v36, %v537_v34  ;;  %v1767_v39 = vpop.f32.mrb[18].mxu0  ;;  %v540_v40 = vpop.f32.mrb[19].mxu1 }
 0x11d   : > { %v2070_v41 = vadd.f32 %v1767_v39, %v1719_v37  ;;  %v845_v42 = vpop.f32.mrb[19].mxu0 }
 0x11e   : > { %v2072_v43 = vadd.f32 %v845_v42, %v540_v40  ;;  %973 = vrot.lane.b32.xlu0 %v2064_v35, %s1879_s29 }
 0x11f   : > { %975 = vrot.lane.b32.xlu1 %v2070_v41, %s1879_s29 }
 0x121   : > { %v1722_v44 = vpop.f32.mrb[20].mxu1 }
 0x122   : > { %v1770_v45 = vpop.f32.mrb[20].mxu0  ;;  %969 = vrot.lane.b32.xlu0 %v2068_v38, %s1879_s29  ;;  %v553_v46 = vpop.f32.mrb[21].mxu1 }
 0x123   : > { %v2080_v47 = vadd.f32 %v1770_v45, %v1722_v44  ;;  %v858_v48 = vpop.f32.mrb[21].mxu0  ;;  %971 = vrot.lane.b32.xlu1 %v2072_v43, %s1879_s29  ;;  %v1723_v49 = vpop.f32.mrb[22].mxu1 }
 0x124   : > { %v2084_v50 = vadd.f32 %v858_v48, %v553_v46  ;;  %v1771_v52 = vpop.f32.mrb[22].mxu0  ;;  %v556_v53 = vpop.f32.mrb[23].mxu1 }
 0x125   : > { %v2086_v55 = vadd.f32 %v1771_v52, %v1723_v49  ;;  %v861_v56 = vpop.f32.mrb[23].mxu0 }
 0x126   : > { %v2088_v58 = vadd.f32 %v861_v56, %v556_v53  ;;  %981 = vrot.lane.b32.xlu0 %v2080_v47, %s1879_s29 }
 0x127   : > { %983 = vrot.lane.b32.xlu1 %v2086_v55, %s1879_s29 }
 0x129   : > { %v1726_v60 = vpop.f32.mrb[24].mxu1 }
 0x12a   : > { %v1774_v61 = vpop.f32.mrb[24].mxu0  ;;  %977 = vrot.lane.b32.xlu0 %v2084_v50, %s1879_s29  ;;  %v569_v62 = vpop.f32.mrb[25].mxu1 }
 0x12b   : > { %v2096_v0 = vadd.f32 %v1774_v61, %v1726_v60  ;;  %v874_v1 = vpop.f32.mrb[25].mxu0  ;;  %979 = vrot.lane.b32.xlu1 %v2088_v58, %s1879_s29  ;;  %v1727_v3 = vpop.f32.mrb[26].mxu1 }
 0x12c   : > { %v2100_v4 = vadd.f32 %v874_v1, %v569_v62  ;;  %v1775_v6 = vpop.f32.mrb[26].mxu0  ;;  %v572_v8 = vpop.f32.mrb[27].mxu1 }
 0x12d   : > { %v2102_v9 = vadd.f32 %v1775_v6, %v1727_v3  ;;  %v877_v10 = vpop.f32.mrb[27].mxu0 }
 0x12e   : > { %v2104_v12 = vadd.f32 %v877_v10, %v572_v8  ;;  %989 = vrot.lane.b32.xlu0 %v2096_v0, %s1879_s29 }
 0x12f   : > { %991 = vrot.lane.b32.xlu1 %v2102_v9, %s1879_s29 }
 0x131   : > { %v1730_v13 = vpop.f32.mrb[28].mxu1 }
 0x132   : > { %v1778_v15 = vpop.f32.mrb[28].mxu0  ;;  %985 = vrot.lane.b32.xlu0 %v2100_v4, %s1879_s29  ;;  %v585_v16 = vpop.f32.mrb[29].mxu1 }
 0x133   : > { %v2112_v18 = vadd.f32 %v1778_v15, %v1730_v13  ;;  %v890_v20 = vpop.f32.mrb[29].mxu0  ;;  %987 = vrot.lane.b32.xlu1 %v2104_v12, %s1879_s29  ;;  %v1731_v21 = vpop.f32.mrb[30].mxu1 }
 0x134   : > { %v2116_v22 = vadd.f32 %v890_v20, %v585_v16  ;;  %v1779_v24 = vpop.f32.mrb[30].mxu0  ;;  %v588_v25 = vpop.f32.mrb[31].mxu1 }
 0x135   : > { %v2118_v27 = vadd.f32 %v1779_v24, %v1731_v21  ;;  %v893_v28 = vpop.f32.mrb[31].mxu0 }
 0x136   : > { %v2120_v30 = vadd.f32 %v893_v28, %v588_v25  ;;  %997 = vrot.lane.b32.xlu0 %v2112_v18, %s1879_s29 }
 0x137   : > { %999 = vrot.lane.b32.xlu1 %v2118_v27, %s1879_s29 }
 0x13a   : > { %993 = vrot.lane.b32.xlu0 %v2116_v22, %s1879_s29 }
 0x13b   : > { %995 = vrot.lane.b32.xlu1 %v2120_v30, %s1879_s29 }
 0x16f   : > { %v942_v32 = vpop.permute.xlu1 %941 }
 0x170   : > { %v2131_v33 = vmax.f32 %v2002_v51, %v942_v32  ;;  %v938_v34 = vpop.permute.xlu0 %937 }
 0x171   : > { %v2136_v37 = vmax.f32 %v2004_v54, %v938_v34 }
 0x172   : > { %1101 = vrot.lane.b32.xlu0 %v2131_v33, %s1880_s30 }
 0x173   : > { %v944_v36 = vpop.permute.xlu1 %943 }
 0x174   : > { %v2139_v39 = vmax.f32 %v2006_v57, %v944_v36  ;;  %v940_v40 = vpop.permute.xlu0 %939 }
 0x175   : > { %v2146_v51 = vmax.f32 %v2010_v59, %v940_v40 }
 0x176   : > { %1103 = vrot.lane.b32.xlu1 %v2139_v39, %s1880_s30  ;;  %1097 = vrot.lane.b32.xlu0 %v2136_v37, %s1880_s30 }
 0x178   : > { %v950_v42 = vpop.permute.xlu0 %949 }
 0x179   : > { %v2149_v44 = vmax.f32 %v2018_v63, %v950_v42  ;;  %v952_v45 = vpop.permute.xlu1 %951 }
 0x17a   : > { %1099 = vrot.lane.b32.xlu1 %v2146_v51, %s1880_s30  ;;  %v2156_v54 = vmax.f32 %v2022_v5, %v952_v45 }
 0x17b   : > { %1109 = vrot.lane.b32.xlu0 %v2149_v44, %s1880_s30 }
 0x17c   : > { %v946_v57 = vpop.permute.xlu0 %945 }
 0x17d   : > { %v2159_v46 = vmax.f32 %v2020_v2, %v946_v57  ;;  %v948_v59 = vpop.permute.xlu1 %947 }
 0x17e   : > { %1111 = vrot.lane.b32.xlu1 %v2156_v54, %s1880_s30  ;;  %v2166_v63 = vmax.f32 %v2024_v7, %v948_v59 }
 0x17f   : > { %1105 = vrot.lane.b32.xlu0 %v2159_v46, %s1880_s30 }
 0x180   : > { %v958_v48 = vpop.permute.xlu0 %957 }
 0x181   : > { %v2169_v49 = vmax.f32 %v2032_v11, %v958_v48  ;;  %v960_v5 = vpop.permute.xlu1 %959 }
 0x182   : > { %1107 = vrot.lane.b32.xlu1 %v2166_v63, %s1880_s30  ;;  %v2176_v2 = vmax.f32 %v2038_v17, %v960_v5 }
 0x183   : > { %1117 = vrot.lane.b32.xlu0 %v2169_v49, %s1880_s30 }
 0x184   : > { %v954_v52 = vpop.permute.xlu0 %953 }
 0x185   : > { %v2179_v53 = vmax.f32 %v2036_v14, %v954_v52  ;;  %v956_v7 = vpop.permute.xlu1 %955 }
 0x186   : > { %1119 = vrot.lane.b32.xlu1 %v2176_v2, %s1880_s30  ;;  %v2186_v11 = vmax.f32 %v2040_v19, %v956_v7 }
 0x187   : > { %1113 = vrot.lane.b32.xlu0 %v2179_v53, %s1880_s30 }
 0x188   : > { %v966_v56 = vpop.permute.xlu0 %965 }
 0x189   : > { %v2189_v60 = vmax.f32 %v2048_v23, %v966_v56  ;;  %v968_v17 = vpop.permute.xlu1 %967 }
 0x18a   : > { %1115 = vrot.lane.b32.xlu1 %v2186_v11, %s1880_s30  ;;  %v2196_v14 = vmax.f32 %v2054_v29, %v968_v17 }
 0x18b   : > { %1125 = vrot.lane.b32.xlu0 %v2189_v60, %s1880_s30 }
 0x18c   : > { %v962_v61 = vpop.permute.xlu0 %961 }
 0x18d   : > { %v2199_v62 = vmax.f32 %v2052_v26, %v962_v61  ;;  %v964_v19 = vpop.permute.xlu1 %963 }
 0x18e   : > { %1127 = vrot.lane.b32.xlu1 %v2196_v14, %s1880_s30  ;;  %v2206_v23 = vmax.f32 %v2056_v31, %v964_v19 }
 0x18f   : > { %1121 = vrot.lane.b32.xlu0 %v2199_v62, %s1880_s30 }
 0x190   : > { %v974_v1 = vpop.permute.xlu0 %973 }
 0x191   : > { %v2209_v3 = vmax.f32 %v2064_v35, %v974_v1  ;;  %v976_v29 = vpop.permute.xlu1 %975 }
 0x192   : > { %1123 = vrot.lane.b32.xlu1 %v2206_v23, %s1880_s30  ;;  %v2216_v26 = vmax.f32 %v2070_v41, %v976_v29 }
 0x193   : > { %1133 = vrot.lane.b32.xlu0 %v2209_v3, %s1880_s30 }
 0x194   : > { %v970_v6 = vpop.permute.xlu0 %969 }
 0x195   : > { %v2219_v8 = vmax.f32 %v2068_v38, %v970_v6  ;;  %v972_v31 = vpop.permute.xlu1 %971 }
 0x196   : > { %1135 = vrot.lane.b32.xlu1 %v2216_v26, %s1880_s30  ;;  %v2226_v35 = vmax.f32 %v2072_v43, %v972_v31 }
 0x197   : > { %1129 = vrot.lane.b32.xlu0 %v2219_v8, %s1880_s30 }
 0x198   : > { %v982_v10 = vpop.permute.xlu0 %981 }
 0x199   : > { %v2229_v13 = vmax.f32 %v2080_v47, %v982_v10  ;;  %v984_v41 = vpop.permute.xlu1 %983 }
 0x19a   : > { %1131 = vrot.lane.b32.xlu1 %v2226_v35, %s1880_s30  ;;  %v2236_v38 = vmax.f32 %v2086_v55, %v984_v41 }
 0x19b   : > { %1141 = vrot.lane.b32.xlu0 %v2229_v13, %s1880_s30 }
 0x19c   : > { %v978_v15 = vpop.permute.xlu0 %977 }
 0x19d   : > { %v2239_v16 = vmax.f32 %v2084_v50, %v978_v15  ;;  %v980_v43 = vpop.permute.xlu1 %979 }
 0x19e   : > { %1143 = vrot.lane.b32.xlu1 %v2236_v38, %s1880_s30  ;;  %v2246_v47 = vmax.f32 %v2088_v58, %v980_v43 }
 0x19f   : > { %1137 = vrot.lane.b32.xlu0 %v2239_v16, %s1880_s30 }
 0x1a0   : > { %v990_v20 = vpop.permute.xlu0 %989 }
 0x1a1   : > { %v2249_v21 = vmax.f32 %v2096_v0, %v990_v20  ;;  %v992_v55 = vpop.permute.xlu1 %991 }
 0x1a2   : > { %1139 = vrot.lane.b32.xlu1 %v2246_v47, %s1880_s30  ;;  %v2256_v50 = vmax.f32 %v2102_v9, %v992_v55 }
 0x1a3   : > { %1149 = vrot.lane.b32.xlu0 %v2249_v21, %s1880_s30 }
 0x1a4   : > { %v986_v24 = vpop.permute.xlu0 %985 }
 0x1a5   : > { %v2259_v25 = vmax.f32 %v2100_v4, %v986_v24  ;;  %v988_v58 = vpop.permute.xlu1 %987 }
 0x1a6   : > { %1151 = vrot.lane.b32.xlu1 %v2256_v50, %s1880_s30  ;;  %v2266_v0 = vmax.f32 %v2104_v12, %v988_v58 }
 0x1a7   : > { %1145 = vrot.lane.b32.xlu0 %v2259_v25, %s1880_s30 }
 0x1a8   : > { %v998_v28 = vpop.permute.xlu0 %997 }
 0x1a9   : > { %v1000_v32 = vpop.permute.xlu1 %999  ;;  %v2281_v12 = vmax.f32 %v2112_v18, %v998_v28 }
 0x1aa   : > { %1147 = vrot.lane.b32.xlu1 %v2266_v0, %s1880_s30  ;;  %v2284_v40 = vmax.f32 %v2118_v27, %v1000_v32 }
 0x1ac   : > { %v994_v9 = vpop.permute.xlu0 %993 }
 0x1ad   : > { %v2271_v4 = vmax.f32 %v2116_v22, %v994_v9  ;;  %v996_v34 = vpop.permute.xlu1 %995  ;;  %v2293_v22 = vld [vmem:[%s2435_s3] ss:$0 sm:$0xff] }
 0x1ae   : > { %v2274_v36 = vmax.f32 %v2120_v30, %v996_v34 }
 0x1af   : > { %1153 = vrot.lane.b32.xlu0 %v2271_v4, %s1880_s30 }
 0x1b0   : > { %1155 = vrot.lane.b32.xlu1 %v2274_v36, %s1880_s30 }
 0x1b3   : > { %1157 = vrot.lane.b32.xlu0 %v2281_v12, %s1880_s30 }
 0x1b4   : > { %1159 = vrot.lane.b32.xlu1 %v2284_v40, %s1880_s30 }
 0x1e4   : > { %v1102_v30 = vpop.permute.xlu0 %1101 }
 0x1e5   : > { %v1195_v42 = vmax.f32 %v2131_v33, %v1102_v30 }
 0x1e7   : > { %v1234_v18 = vadd.f32 %v2293_v22, %v1195_v42 }
 0x1e8   : > { %v1104_v45 = vpop.permute.xlu1 %1103  ;;  %v1098_v27 = vpop.permute.xlu0 %1097 }
 0x1e9   : > { %v1266_v57 = vmax.f32 %v1234_v18, 0.0  ;;  %v1196_v59 = vmax.f32 %v2139_v39, %v1104_v45  ;;  %v1193_v48 = vmax.f32 %v2136_v37, %v1098_v27 }
 0x1eb   : > { %v1606_v5 = vpack.c.bf16 %v1266_v57, %v1266_v57  ;;  %v1235_v33 = vadd.f32 %v2293_v22, %v1196_v59  ;;  %v1232_v52 = vadd.f32 %v2293_v22, %v1193_v48 }
 0x1ec   : > { %v1100_v7 = vpop.permute.xlu1 %1099 }
 0x1ed   : > { %1427 = vst.msk [vmem:[%s2303_s10 + $0x8] sm:$0xf] %vm1424_vm0, %v1606_v5  ;;  %v1267_v39 = vmax.f32 %v1235_v33, 0.0  ;;  %v1264_v56 = vmax.f32 %v1232_v52, 0.0  ;;  %v1194_v37 = vmax.f32 %v2146_v51, %v1100_v7  ;;  %v1110_v17 = vpop.permute.xlu0 %1109 }
 0x1ee   : > { %v1199_v61 = vmax.f32 %v2149_v44, %v1110_v17 }
 0x1ef   : > { %v1607_v19 = vpack.c.bf16 %v1267_v39, %v1267_v39  ;;  %v1604_v1 = vpack.c.bf16 %v1264_v56, %v1264_v56  ;;  %v1233_v29 = vadd.f32 %v2293_v22, %v1194_v37 }
 0x1f0   : > { %v1238_v6 = vadd.f32 %v2293_v22, %v1199_v61  ;;  %v1112_v31 = vpop.permute.xlu1 %1111 }
 0x1f1   : > { %1428 = vst.msk [vmem:[%s2303_s10 + $0xc] sm:$0xf] %vm1424_vm0, %v1607_v19  ;;  %1425 = vst.msk [vmem:[%s2303_s10] sm:$0xf] %vm1424_vm0, %v1604_v1  ;;  %v1265_v10 = vmax.f32 %v1233_v29, 0.0  ;;  %v1200_v41 = vmax.f32 %v2156_v54, %v1112_v31  ;;  %v1106_v51 = vpop.permute.xlu0 %1105 }
 0x1f2   : > { %v1270_v15 = vmax.f32 %v1238_v6, 0.0  ;;  %v1197_v44 = vmax.f32 %v2159_v46, %v1106_v51 }
 0x1f3   : > { %v1605_v43 = vpack.c.bf16 %v1265_v10, %v1265_v10  ;;  %v1239_v20 = vadd.f32 %v2293_v22, %v1200_v41 }
 0x1f4   : > { %v1610_v55 = vpack.c.bf16 %v1270_v15, %v1270_v15  ;;  %v1236_v24 = vadd.f32 %v2293_v22, %v1197_v44  ;;  %v1108_v58 = vpop.permute.xlu1 %1107 }
 0x1f5   : > { %1426 = vst.msk [vmem:[%s2303_s10 + $0x4] sm:$0xf] %vm1424_vm0, %v1605_v43  ;;  %v1271_v28 = vmax.f32 %v1239_v20, 0.0  ;;  %v1198_v32 = vmax.f32 %v2166_v63, %v1108_v58  ;;  %v1118_v9 = vpop.permute.xlu0 %1117 }
 0x1f6   : > { %1431 = vst.msk [vmem:[%s2303_s10 + $0x18] sm:$0xf] %vm1424_vm0, %v1610_v55  ;;  %v1268_v54 = vmax.f32 %v1236_v24, 0.0  ;;  %v1203_v46 = vmax.f32 %v2169_v49, %v1118_v9 }
 0x1f7   : > { %v1611_v34 = vpack.c.bf16 %v1271_v28, %v1271_v28  ;;  %v1237_v30 = vadd.f32 %v2293_v22, %v1198_v32 }
 0x1f8   : > { %v1608_v42 = vpack.c.bf16 %v1268_v54, %v1268_v54  ;;  %v1242_v18 = vadd.f32 %v2293_v22, %v1203_v46  ;;  %v1120_v45 = vpop.permute.xlu1 %1119 }
 0x1f9   : > { %1432 = vst.msk [vmem:[%s2303_s10 + $0x1c] sm:$0xf] %vm1424_vm0, %v1611_v34  ;;  %v1269_v27 = vmax.f32 %v1237_v30, 0.0  ;;  %v1204_v63 = vmax.f32 %v2176_v2, %v1120_v45  ;;  %v1114_v57 = vpop.permute.xlu0 %1113 }
 0x1fa   : > { %1429 = vst.msk [vmem:[%s2303_s10 + $0x10] sm:$0xf] %vm1424_vm0, %v1608_v42  ;;  %v1274_v59 = vmax.f32 %v1242_v18, 0.0  ;;  %v1201_v49 = vmax.f32 %v2179_v53, %v1114_v57 }
 0x1fb   : > { %v1609_v48 = vpack.c.bf16 %v1269_v27, %v1269_v27  ;;  %v1243_v5 = vadd.f32 %v2293_v22, %v1204_v63 }
 0x1fc   : > { %v1614_v33 = vpack.c.bf16 %v1274_v59, %v1274_v59  ;;  %v1240_v52 = vadd.f32 %v2293_v22, %v1201_v49  ;;  %v1116_v7 = vpop.permute.xlu1 %1115 }
 0x1fd   : > { %1430 = vst.msk [vmem:[%s2303_s10 + $0x14] sm:$0xf] %vm1424_vm0, %v1609_v48  ;;  %v1275_v39 = vmax.f32 %v1243_v5, 0.0  ;;  %v1202_v2 = vmax.f32 %v2186_v11, %v1116_v7  ;;  %v1126_v56 = vpop.permute.xlu0 %1125 }
 0x1fe   : > { %1435 = vst.msk [vmem:[%s2303_s10 + $0x28] sm:$0xf] %vm1424_vm0, %v1614_v33  ;;  %v1272_v37 = vmax.f32 %v1240_v52, 0.0  ;;  %v1207_v53 = vmax.f32 %v2189_v60, %v1126_v56 }
 0x1ff   : > { %v1615_v17 = vpack.c.bf16 %v1275_v39, %v1275_v39  ;;  %v1241_v61 = vadd.f32 %v2293_v22, %v1202_v2 }
 0x200   : > { %v1612_v19 = vpack.c.bf16 %v1272_v37, %v1272_v37  ;;  %v1246_v1 = vadd.f32 %v2293_v22, %v1207_v53  ;;  %v1128_v29 = vpop.permute.xlu1 %1127 }
 0x201   : > { %1436 = vst.msk [vmem:[%s2303_s10 + $0x2c] sm:$0xf] %vm1424_vm0, %v1615_v17  ;;  %v1273_v6 = vmax.f32 %v1241_v61, 0.0  ;;  %v1208_v11 = vmax.f32 %v2196_v14, %v1128_v29  ;;  %v1122_v31 = vpop.permute.xlu0 %1121 }
 0x202   : > { %1433 = vst.msk [vmem:[%s2303_s10 + $0x20] sm:$0xf] %vm1424_vm0, %v1612_v19  ;;  %v1278_v10 = vmax.f32 %v1246_v1, 0.0  ;;  %v1205_v60 = vmax.f32 %v2199_v62, %v1122_v31 }
 0x203   : > { %v1613_v41 = vpack.c.bf16 %v1273_v6, %v1273_v6  ;;  %v1247_v51 = vadd.f32 %v2293_v22, %v1208_v11 }
 0x204   : > { %v1618_v15 = vpack.c.bf16 %v1278_v10, %v1278_v10  ;;  %v1244_v44 = vadd.f32 %v2293_v22, %v1205_v60  ;;  %v1124_v43 = vpop.permute.xlu1 %1123 }
 0x205   : > { %1434 = vst.msk [vmem:[%s2303_s10 + $0x24] sm:$0xf] %vm1424_vm0, %v1613_v41  ;;  %v1279_v20 = vmax.f32 %v1247_v51, 0.0  ;;  %v1206_v14 = vmax.f32 %v2206_v23, %v1124_v43  ;;  %v1134_v55 = vpop.permute.xlu0 %1133 }
 0x206   : > { %1439 = vst.msk [vmem:[%s2303_s10 + $0x38] sm:$0xf] %vm1424_vm0, %v1618_v15  ;;  %v1276_v24 = vmax.f32 %v1244_v44, 0.0  ;;  %v1211_v62 = vmax.f32 %v2209_v3, %v1134_v55 }
 0x207   : > { %v1619_v58 = vpack.c.bf16 %v1279_v20, %v1279_v20  ;;  %v1245_v28 = vadd.f32 %v2293_v22, %v1206_v14 }
 0x208   : > { %v1616_v32 = vpack.c.bf16 %v1276_v24, %v1276_v24  ;;  %v1250_v9 = vadd.f32 %v2293_v22, %v1211_v62  ;;  %v1136_v54 = vpop.permute.xlu1 %1135 }
 0x209   : > { %1440 = vst.msk [vmem:[%s2303_s10 + $0x3c] sm:$0xf] %vm1424_vm0, %v1619_v58  ;;  %v1277_v46 = vmax.f32 %v1245_v28, 0.0  ;;  %v1212_v23 = vmax.f32 %v2216_v26, %v1136_v54  ;;  %v1130_v34 = vpop.permute.xlu0 %1129 }
 0x20a   : > { %1437 = vst.msk [vmem:[%s2303_s10 + $0x30] sm:$0xf] %vm1424_vm0, %v1616_v32  ;;  %v1282_v30 = vmax.f32 %v1250_v9, 0.0  ;;  %v1209_v3 = vmax.f32 %v2219_v8, %v1130_v34 }
 0x20b   : > { %v1617_v42 = vpack.c.bf16 %v1277_v46, %v1277_v46  ;;  %v1251_v18 = vadd.f32 %v2293_v22, %v1212_v23 }
 0x20c   : > { %v1622_v45 = vpack.c.bf16 %v1282_v30, %v1282_v30  ;;  %v1248_v27 = vadd.f32 %v2293_v22, %v1209_v3  ;;  %v1132_v63 = vpop.permute.xlu1 %1131 }
 0x20d   : > { %1438 = vst.msk [vmem:[%s2303_s10 + $0x34] sm:$0xf] %vm1424_vm0, %v1617_v42  ;;  %v1283_v57 = vmax.f32 %v1251_v18, 0.0  ;;  %v1210_v26 = vmax.f32 %v2226_v35, %v1132_v63  ;;  %v1142_v59 = vpop.permute.xlu0 %1141 }
 0x20e   : > { %1443 = vst.msk [vmem:[%s2303_s10 + $0x48] sm:$0xf] %vm1424_vm0, %v1622_v45  ;;  %v1280_v49 = vmax.f32 %v1248_v27, 0.0  ;;  %v1215_v8 = vmax.f32 %v2229_v13, %v1142_v59 }
 0x20f   : > { %v1623_v48 = vpack.c.bf16 %v1283_v57, %v1283_v57  ;;  %v1249_v5 = vadd.f32 %v2293_v22, %v1210_v26 }
 0x210   : > { %v1620_v33 = vpack.c.bf16 %v1280_v49, %v1280_v49  ;;  %v1254_v52 = vadd.f32 %v2293_v22, %v1215_v8  ;;  %v1144_v7 = vpop.permute.xlu1 %1143 }
 0x211   : > { %1444 = vst.msk [vmem:[%s2303_s10 + $0x4c] sm:$0xf] %vm1424_vm0, %v1623_v48  ;;  %v1281_v39 = vmax.f32 %v1249_v5, 0.0  ;;  %v1216_v35 = vmax.f32 %v2236_v38, %v1144_v7  ;;  %v1138_v2 = vpop.permute.xlu0 %1137 }
 0x212   : > { %1441 = vst.msk [vmem:[%s2303_s10 + $0x40] sm:$0xf] %vm1424_vm0, %v1620_v33  ;;  %v1286_v56 = vmax.f32 %v1254_v52, 0.0  ;;  %v1213_v13 = vmax.f32 %v2239_v16, %v1138_v2 }
 0x213   : > { %v1621_v37 = vpack.c.bf16 %v1281_v39, %v1281_v39  ;;  %v1255_v53 = vadd.f32 %v2293_v22, %v1216_v35 }
 0x214   : > { %v1626_v17 = vpack.c.bf16 %v1286_v56, %v1286_v56  ;;  %v1252_v61 = vadd.f32 %v2293_v22, %v1213_v13  ;;  %v1140_v19 = vpop.permute.xlu1 %1139 }
 0x215   : > { %1442 = vst.msk [vmem:[%s2303_s10 + $0x44] sm:$0xf] %vm1424_vm0, %v1621_v37  ;;  %v1287_v1 = vmax.f32 %v1255_v53, 0.0  ;;  %v1214_v38 = vmax.f32 %v2246_v47, %v1140_v19  ;;  %v1150_v29 = vpop.permute.xlu0 %1149 }
 0x216   : > { %1447 = vst.msk [vmem:[%s2303_s10 + $0x58] sm:$0xf] %vm1424_vm0, %v1626_v17  ;;  %v1284_v6 = vmax.f32 %v1252_v61, 0.0  ;;  %v1219_v16 = vmax.f32 %v2249_v21, %v1150_v29 }
 0x217   : > { %v1627_v11 = vpack.c.bf16 %v1287_v1, %v1287_v1  ;;  %v1253_v31 = vadd.f32 %v2293_v22, %v1214_v38 }
 0x218   : > { %v1624_v10 = vpack.c.bf16 %v1284_v6, %v1284_v6  ;;  %v1258_v60 = vadd.f32 %v2293_v22, %v1219_v16  ;;  %v1152_v41 = vpop.permute.xlu1 %1151 }
 0x219   : > { %1448 = vst.msk [vmem:[%s2303_s10 + $0x5c] sm:$0xf] %vm1424_vm0, %v1627_v11  ;;  %v1285_v51 = vmax.f32 %v1253_v31, 0.0  ;;  %v1220_v47 = vmax.f32 %v2256_v50, %v1152_v41  ;;  %v1146_v15 = vpop.permute.xlu0 %1145 }
 0x21a   : > { %1445 = vst.msk [vmem:[%s2303_s10 + $0x50] sm:$0xf] %vm1424_vm0, %v1624_v10  ;;  %v1290_v44 = vmax.f32 %v1258_v60, 0.0  ;;  %v1217_v21 = vmax.f32 %v2259_v25, %v1146_v15 }
 0x21b   : > { %v1625_v43 = vpack.c.bf16 %v1285_v51, %v1285_v51  ;;  %v1259_v20 = vadd.f32 %v2293_v22, %v1220_v47 }
 0x21c   : > { %v1630_v14 = vpack.c.bf16 %v1290_v44, %v1290_v44  ;;  %v1256_v55 = vadd.f32 %v2293_v22, %v1217_v21  ;;  %v1148_v24 = vpop.permute.xlu1 %1147 }
 0x21d   : > { %1446 = vst.msk [vmem:[%s2303_s10 + $0x54] sm:$0xf] %vm1424_vm0, %v1625_v43  ;;  %v1291_v62 = vmax.f32 %v1259_v20, 0.0  ;;  %v1218_v50 = vmax.f32 %v2266_v0, %v1148_v24 }
 0x21e   : > { %1451 = vst.msk [vmem:[%s2303_s10 + $0x68] sm:$0xf] %vm1424_vm0, %v1630_v14  ;;  %v1288_v58 = vmax.f32 %v1256_v55, 0.0 }
 0x21f   : > { %v1631_v28 = vpack.c.bf16 %v1291_v62, %v1291_v62  ;;  %v1257_v25 = vadd.f32 %v2293_v22, %v1218_v50 }
 0x220   : > { %v1628_v32 = vpack.c.bf16 %v1288_v58, %v1288_v58 }
 0x221   : > { %1452 = vst.msk [vmem:[%s2303_s10 + $0x6c] sm:$0xf] %vm1424_vm0, %v1631_v28  ;;  %v1289_v9 = vmax.f32 %v1257_v25, 0.0  ;;  %v1154_v54 = vpop.permute.xlu0 %1153 }
 0x222   : > { %1449 = vst.msk [vmem:[%s2303_s10 + $0x60] sm:$0xf] %vm1424_vm0, %v1628_v32  ;;  %v1221_v46 = vmax.f32 %v2271_v4, %v1154_v54  ;;  %v1156_v23 = vpop.permute.xlu1 %1155 }
 0x223   : > { %v1629_v34 = vpack.c.bf16 %v1289_v9, %v1289_v9  ;;  %v1222_v0 = vmax.f32 %v2274_v36, %v1156_v23 }
 0x224   : > { %v1260_v30 = vadd.f32 %v2293_v22, %v1221_v46 }
 0x225   : > { %1450 = vst.msk [vmem:[%s2303_s10 + $0x64] sm:$0xf] %vm1424_vm0, %v1629_v34  ;;  %v1261_v3 = vadd.f32 %v2293_v22, %v1222_v0  ;;  %v1158_v42 = vpop.permute.xlu0 %1157 }
 0x226   : > { %v1292_v18 = vmax.f32 %v1260_v30, 0.0  ;;  %v1223_v45 = vmax.f32 %v2281_v12, %v1158_v42  ;;  %v1160_v27 = vpop.permute.xlu1 %1159 }
 0x227   : > { %v1293_v4 = vmax.f32 %v1261_v3, 0.0  ;;  %v1224_v63 = vmax.f32 %v2284_v40, %v1160_v27 }
 0x228   : > { %v1632_v57 = vpack.c.bf16 %v1292_v18, %v1292_v18  ;;  %v1262_v36 = vadd.f32 %v2293_v22, %v1223_v45 }
 0x229   : > { %v1633_v26 = vpack.c.bf16 %v1293_v4, %v1293_v4  ;;  %v1263_v59 = vadd.f32 %v2293_v22, %v1224_v63 }
 0x22a   : > { %1453 = vst.msk [vmem:[%s2303_s10 + $0x70] sm:$0xf] %vm1424_vm0, %v1632_v57  ;;  %v1294_v49 = vmax.f32 %v1262_v36, 0.0 }
 0x22b   : > { %1454 = vst.msk [vmem:[%s2303_s10 + $0x74] sm:$0xf] %vm1424_vm0, %v1633_v26  ;;  %v1295_v8 = vmax.f32 %v1263_v59, 0.0 }
 0x22c   : > { %v1634_v48 = vpack.c.bf16 %v1294_v49, %v1294_v49 }
 0x22d   : > { %v1635_v5 = vpack.c.bf16 %v1295_v8, %v1295_v8 }
 0x22e   : > { %1455 = vst.msk [vmem:[%s2303_s10 + $0x78] sm:$0xf] %vm1424_vm0, %v1634_v48 }
 0x22f   : > { %1456 = vst.msk [vmem:[%s2303_s10 + $0x7c] sm:$0xf] %vm1424_vm0, %v1635_v5 }
 0x230 PF: > { %s14_s15 = sadd.s32 1, %s1877_s15  }
 0x231   : > { %p11_p4 = scmp.ge.s32.totalorder %s14_s15, 4  }
 0x233   :  { %13 = sbr.rel (!%p11_p4) target bundleno = 1 (0x1), region = 66 }

// kernel: complex2vec_forward.4
= control target key start
LH: loop header
LB: loop body
LE: loop exit
PB: predicated region body
PF: predicated region fallthrough
CT: control target
= control target key end

     0   :  { %s1339_s15 = smov 0   ;;  %s1585_s0 = inlined_call_operand.vmem [shape: bf16[2,20,512], index: 0, kind: input, shape index: {}]   ;;  %s1586_s1 = inlined_call_operand.vmem [shape: bf16[512,128], index: 1, kind: input, shape index: {}]   ;;  %s1587_s2 = inlined_call_operand.vmem [shape: bf16[512,128], index: 2, kind: input, shape index: {}]   ;;  %s1588_s3 = inlined_call_operand.vmem [shape: f32[1,32], index: 3, kind: input, shape index: {}]   ;;  %s1589_s4 = inlined_call_operand.vmem [shape: bf16[2,16,32], index: 4, kind: output, shape index: {}]  }
   0x1 LB: > { %s1037_s16 = sadd.s32 4294967295, %s1310_s15   ;;  %p1041_p0 = scmp.ge.s32.totalorder %s1310_s15, 1  ;;  %s1310_s15 = sphi %s1339_s15, %s14_s15  }
   0x2   : > { %p162_p1 = scmp.lt.s32.totalorder %s1310_s15, 3 }
   0x4   : > { %p163_p2 = pnand %p1041_p0, %p162_p1 }
   0x5   : > { %v1228_v0 = vld [vmem:[%s1587_s2 + $0x40] sm:$0xff] (!%p163_p2)   ;;  %v1232_v4 = vld [vmem:[%s1587_s2 + $0x48] sm:$0xff] (!%p163_p2)   ;;  %v1236_v8 = vld [vmem:[%s1587_s2 + $0x50] sm:$0xff] (!%p163_p2)   ;;  %p188_p3 = scmp.lt.s32.totalorder (!%p163_p2), %s1037_s16, 1  ;;  %vm361_vm0 = vcmask (!%p163_p2), 1045504   ;;  %s1313_s5 = smov (!%p163_p2), 64  }
   0x6   : > { %166 = sbr.rel (%p163_p2) target bundleno = 535 (0x217), region = 36  ;;  %v1229_v1 = vld [vmem:[%s1587_s2 + $0xc0] sm:$0xff] (!%p163_p2)   ;;  %1129 = vmatprep.subr.bf16.mxu0 (!%p163_p2), %v1228_v0  ;;  %v1233_v5 = vld [vmem:[%s1587_s2 + $0xc8] sm:$0xff] (!%p163_p2)   ;;  %v1237_v9 = vld [vmem:[%s1587_s2 + $0xd0] sm:$0xff] (!%p163_p2)   ;;  %vm979_vm1 = vcmask (!%p163_p2), 257024  }
   0x7   : > { %v1230_v2 = vld [vmem:[%s1587_s2] sm:$0xff] (!%p163_p2)   ;;  %1151 = vmatprep.subr.bf16.mxu1 (!%p163_p2), %v1229_v1  ;;  %v1234_v6 = vld [vmem:[%s1587_s2 + $0x8] sm:$0xff] (!%p163_p2)   ;;  %v1238_v10 = vld [vmem:[%s1587_s2 + $0x10] sm:$0xff] (!%p163_p2)  }
   0x8   : > { %v1231_v3 = vld [vmem:[%s1587_s2 + $0x80] sm:$0xff] (!%p163_p2)   ;;  %1130 = vmatpush3.bf16.msra.mxu0 (!%p163_p2), %v1230_v2  ;;  %v1235_v7 = vld [vmem:[%s1587_s2 + $0x88] sm:$0xff] (!%p163_p2)   ;;  %v1239_v11 = vld [vmem:[%s1587_s2 + $0x90] sm:$0xff] (!%p163_p2)  }
   0x9   : > { %1152 = vmatpush3.bf16.msra.mxu1 (!%p163_p2), %v1231_v3  ;;  %1131 = vmatprep.subr.bf16.mxu0 (!%p163_p2), %v1232_v4  ;;  %v1240_v12 = vld [vmem:[%s1587_s2 + $0x58] sm:$0xff] (!%p163_p2)   ;;  %v1244_v16 = vld [vmem:[%s1587_s2 + $0x60] sm:$0xff] (!%p163_p2)   ;;  %v1248_v20 = vld [vmem:[%s1587_s2 + $0x68] sm:$0xff] (!%p163_p2)  }
   0xa   : > { %1153 = vmatprep.subr.bf16.mxu1 (!%p163_p2), %v1233_v5  ;;  %v1241_v13 = vld [vmem:[%s1587_s2 + $0xd8] sm:$0xff] (!%p163_p2)   ;;  %v1245_v17 = vld [vmem:[%s1587_s2 + $0xe0] sm:$0xff] (!%p163_p2)   ;;  %v1249_v21 = vld [vmem:[%s1587_s2 + $0xe8] sm:$0xff] (!%p163_p2)  }
   0xb   : > { %v1242_v14 = vld [vmem:[%s1587_s2 + $0x18] sm:$0xff] (!%p163_p2)   ;;  %v1246_v18 = vld [vmem:[%s1587_s2 + $0x20] sm:$0xff] (!%p163_p2)   ;;  %v1250_v22 = vld [vmem:[%s1587_s2 + $0x28] sm:$0xff] (!%p163_p2)  }
   0xc   : > { %1132 = vmatpush3.bf16.msra.mxu0 (!%p163_p2), %v1234_v6  ;;  %v1243_v15 = vld [vmem:[%s1587_s2 + $0x98] sm:$0xff] (!%p163_p2)   ;;  %v1247_v19 = vld [vmem:[%s1587_s2 + $0xa0] sm:$0xff] (!%p163_p2)   ;;  %v1251_v23 = vld [vmem:[%s1587_s2 + $0xa8] sm:$0xff] (!%p163_p2)  }
   0xd   : > { %1154 = vmatpush3.bf16.msra.mxu1 %v1235_v7  ;;  %1133 = vmatprep.subr.bf16.mxu0 %v1236_v8  ;;  %s1591_s16 = smov (!%p188_p3, %s1037_s16), 1  ;;  %v1252_v24 = vld [vmem:[%s1587_s2 + $0x70] sm:$0xff]   ;;  %v1256_v28 = vld [vmem:[%s1587_s2 + $0x78] sm:$0xff]   ;;  %v1268_v46 = vld [vmem:[%s1586_s1 + $0x40] sm:$0xff]  }
   0xe   : > { %1155 = vmatprep.subr.bf16.mxu1 %v1237_v9  ;;  %v1253_v25 = vld [vmem:[%s1587_s2 + $0xf0] sm:$0xff]   ;;  %s1217_s21 = smul.u32 48, %s1591_s16  ;;  %v1257_v29 = vld [vmem:[%s1587_s2 + $0xf8] sm:$0xff]   ;;  %v1269_v57 = vld [vmem:[%s1586_s1 + $0xc0] sm:$0xff]   ;;  %s1126_s9 = sshll.u32 %s1591_s16, 3 }
   0xf   : > { %v1254_v26 = vld [vmem:[%s1587_s2 + $0x30] sm:$0xff]   ;;  %v1258_v30 = vld [vmem:[%s1587_s2 + $0x38] sm:$0xff]   ;;  %v1270_v60 = vld [vmem:[%s1586_s1] sm:$0xff]   ;;  %s197_s12 = scalar_lea.vmem %s1589_s4, %s1126_s9 }
  0x10   : > { %1134 = vmatpush3.bf16.msra.mxu0 %v1238_v10  ;;  %v1255_v27 = vld [vmem:[%s1587_s2 + $0xb0] sm:$0xff]   ;;  %s1447_s6 = scalar_lea.vmem %s1585_s0, %s1217_s21  ;;  %v1259_v31 = vld [vmem:[%s1587_s2 + $0xb8] sm:$0xff]   ;;  %v1271_v61 = vld [vmem:[%s1586_s1 + $0x80] sm:$0xff]  }
  0x11   : > { %1156 = vmatpush3.bf16.msra.mxu1 %v1239_v11  ;;  %1135 = vmatprep.subr.bf16.mxu0 %v1240_v12  ;;  %v1456_v32 = vld [vmem:[%s1447_s6 + $0x10] sm:$0xff]  ;;  %v203_v33 = vld [vmem:[%s1447_s6] sm:$0xcc]  ;;  %v205_v34 = vld [vmem:[%s1447_s6 + $0x20] sm:$0x33] }
  0x12   : > { %1157 = vmatprep.subr.bf16.mxu1 %v1241_v13  ;;  %v1046_v35 = vcombine.high %v203_v33, %v1456_v32  ;;  %v1050_v36 = vcombine.high %v205_v34, %v205_v34  ;;  %v1462_v37 = vld [vmem:[%s1447_s6 + $0x18] sm:$0xff]  ;;  %v204_v38 = vld [vmem:[%s1447_s6 + $0x8] sm:$0xcc]  ;;  %v206_v39 = vld [vmem:[%s1447_s6 + $0x28] sm:$0x33]  ;;  %v1045_v40 = vcombine.low %v203_v33, %v1456_v32  ;;  %v1049_v41 = vcombine.low %v205_v34, %v205_v34 }
  0x13   : > { %v1048_v42 = vcombine.high %v204_v38, %v1462_v37  ;;  %v1052_v43 = vcombine.high %v206_v39, %v206_v39  ;;  %v1047_v44 = vcombine.low %v204_v38, %v1462_v37  ;;  %v1051_v45 = vcombine.low %v206_v39, %v206_v39  ;;  %v1272_v62 = vld [vmem:[%s1586_s1 + $0x48] sm:$0xff]   ;;  %v1276_v2 = vld [vmem:[%s1586_s1 + $0x50] sm:$0xff]   ;;  %v1280_v6 = vld [vmem:[%s1586_s1 + $0x58] sm:$0xff]  }
  0x14   : > { %1136 = vmatpush3.bf16.msra.mxu0 %v1242_v14  ;;  %v365_v47 = vrot.slane %v1046_v35, 2  ;;  %v366_v48 = vrot.slane %v1050_v36, 2  ;;  %v362_v49 = vrot.slane %v1045_v40, 2  ;;  %v363_v50 = vrot.slane %v1049_v41, 2  ;;  %v1273_v63 = vld [vmem:[%s1586_s1 + $0xc8] sm:$0xff]   ;;  %v1277_v3 = vld [vmem:[%s1586_s1 + $0xd0] sm:$0xff]  }
  0x15   : > { %1158 = vmatpush3.bf16.msra.mxu1 %v1243_v15  ;;  %1137 = vmatprep.subr.bf16.mxu0 %v1244_v16  ;;  %v371_v51 = vrot.slane %v1048_v42, 2  ;;  %v372_v52 = vrot.slane %v1052_v43, 2  ;;  %v368_v53 = vrot.slane %v1047_v44, 2  ;;  %v369_v54 = vrot.slane %v1051_v45, 2  ;;  %v1274_v0 = vld [vmem:[%s1586_s1 + $0x8] sm:$0xff]   ;;  %v1278_v4 = vld [vmem:[%s1586_s1 + $0x10] sm:$0xff]  }
  0x16   : > { %1159 = vmatprep.subr.bf16.mxu1 %v1245_v17  ;;  %v367_v55 = vsel %vm361_vm0, %v365_v47, %v366_v48  ;;  %v364_v56 = vsel %vm361_vm0, %v362_v49, %v363_v50  ;;  %v1275_v1 = vld [vmem:[%s1586_s1 + $0x88] sm:$0xff]   ;;  %v1279_v5 = vld [vmem:[%s1586_s1 + $0x90] sm:$0xff]   ;;  %v1281_v7 = vld [vmem:[%s1586_s1 + $0xd8] sm:$0xff]  }
  0x17   : > { %602 = vmatprep.mubr.bf16.mxu0 %v367_v55  ;;  %v373_v58 = vsel %vm361_vm0, %v371_v51, %v372_v52  ;;  %v370_v59 = vsel %vm361_vm0, %v368_v53, %v369_v54  ;;  %v1282_v8 = vld [vmem:[%s1586_s1 + $0x18] sm:$0xff]   ;;  %v1284_v10 = vld [vmem:[%s1586_s1 + $0x60] sm:$0xff]   ;;  %v1288_v14 = vld [vmem:[%s1586_s1 + $0x68] sm:$0xff]  }
  0x18   : > { %1138 = vmatpush3.bf16.msra.mxu0 %v1246_v18  ;;  %643 = vmatprep.mubr.bf16.mxu1 %v373_v58  ;;  %v1283_v9 = vld [vmem:[%s1586_s1 + $0x98] sm:$0xff]   ;;  %v1285_v11 = vld [vmem:[%s1586_s1 + $0xe0] sm:$0xff]   ;;  %v1289_v15 = vld [vmem:[%s1586_s1 + $0xe8] sm:$0xff]  }
  0x19   : > { %1160 = vmatpush3.bf16.msra.mxu1 %v1247_v19  ;;  %1139 = vmatprep.subr.bf16.mxu0 %v1248_v20  ;;  %v1286_v12 = vld [vmem:[%s1586_s1 + $0x20] sm:$0xff]   ;;  %v1290_v16 = vld [vmem:[%s1586_s1 + $0x28] sm:$0xff]   ;;  %v1292_v18 = vld [vmem:[%s1586_s1 + $0x70] sm:$0xff]  }
  0x1a   : > { %1161 = vmatprep.subr.bf16.mxu1 %v1249_v21  ;;  %v1287_v13 = vld [vmem:[%s1586_s1 + $0xa0] sm:$0xff]   ;;  %v1291_v17 = vld [vmem:[%s1586_s1 + $0xa8] sm:$0xff]   ;;  %v1293_v19 = vld [vmem:[%s1586_s1 + $0xf0] sm:$0xff]  }
  0x1b   : > { %v1294_v20 = vld [vmem:[%s1586_s1 + $0x30] sm:$0xff]  }
  0x1c   : > { %1140 = vmatpush3.bf16.msra.mxu0 %v1250_v22  ;;  %v1295_v21 = vld [vmem:[%s1586_s1 + $0xb0] sm:$0xff]   ;;  %v1296_v22 = vld [vmem:[%s1586_s1 + $0x78] sm:$0xff]  }
  0x1d   : > { %1162 = vmatpush3.bf16.msra.mxu1 %v1251_v23  ;;  %1141 = vmatprep.subr.bf16.mxu0 %v1252_v24  ;;  %v1297_v23 = vld [vmem:[%s1586_s1 + $0xf8] sm:$0xff]  }
  0x1e   : > { %1163 = vmatprep.subr.bf16.mxu1 %v1253_v25  ;;  %v1298_v24 = vld [vmem:[%s1586_s1 + $0x38] sm:$0xff]  }
  0x1f   : > { %v1299_v25 = vld [vmem:[%s1586_s1 + $0xb8] sm:$0xff]  }
  0x20   : > { %1142 = vmatpush3.bf16.msra.mxu0 %v1254_v26  ;;  %v199_v26 = vld [vmem:[%s1447_s6] sm:$0xff] }
  0x21   : > { %1164 = vmatpush3.bf16.msra.mxu1 %v1255_v27  ;;  %1143 = vmatprep.subr.bf16.mxu0 %v1256_v28  ;;  %v200_v27 = vld [vmem:[%s1447_s6 + $0x8] sm:$0xff]  ;;  %v1085_v28 = vcombine.low %v199_v26, %v1456_v32  ;;  %s1312_s6 = smov 96  }
  0x22   : > { %1165 = vmatprep.subr.bf16.mxu1 %v1257_v29  ;;  %v1086_v29 = vcombine.high %v199_v26, %v1456_v32 }
  0x24   : > { %1144 = vmatpush3.bf16.msra.mxu0 %v1258_v30  ;;  %v1087_v30 = vcombine.low %v200_v27, %v1462_v37 }
  0x25   : > { %1166 = vmatpush3.bf16.msra.mxu1 %v1259_v31  ;;  %1173 = vmatprep.subr.bf16.mxu0 %v1268_v46  ;;  %v1088_v31 = vcombine.high %v200_v27, %v1462_v37 }
  0x26   : > { %1195 = vmatprep.subr.bf16.mxu1 %v1269_v57 }
  0x27   : > { %603 = vmatmul.mubr.bf16.vlgmr.msra.gmra.mrb[0].mxu0 %v364_v56 }
  0x28   : > { %644 = vmatmul.mubr.bf16.vlgmr.msra.gmra.mrb[0].mxu1 %v370_v59  ;;  %1174 = vmatpush3.bf16.msra.mxu0 %v1270_v60 }
  0x29   : > { %1196 = vmatpush3.bf16.msra.mxu1 %v1271_v61  ;;  %1175 = vmatprep.subr.bf16.mxu0 %v1272_v62 }
  0x2a   : > { %1197 = vmatprep.subr.bf16.mxu1 %v1273_v63  ;;  %890 = vmatprep.mubr.bf16.mxu0 %v1086_v29 }
  0x2b   : > { %931 = vmatprep.mubr.bf16.mxu1 %v1088_v31 }
  0x2c   : > { %1176 = vmatpush3.bf16.msra.mxu0 %v1274_v0 }
  0x2d   : > { %1198 = vmatpush3.bf16.msra.mxu1 %v1275_v1  ;;  %1177 = vmatprep.subr.bf16.mxu0 %v1276_v2  ;;  %v1121_v2 = vld [vmem:[%s1588_s3] ss:$0 sm:$0xff] }
  0x2e   : > { %1199 = vmatprep.subr.bf16.mxu1 %v1277_v3 }
  0x30   : > { %1178 = vmatpush3.bf16.msra.mxu0 %v1278_v4 }
  0x31   : > { %1200 = vmatpush3.bf16.msra.mxu1 %v1279_v5  ;;  %1179 = vmatprep.subr.bf16.mxu0 %v1280_v6 }
  0x32   : > { %1201 = vmatprep.subr.bf16.mxu1 %v1281_v7 }
  0x34   : > { %1180 = vmatpush3.bf16.msra.mxu0 %v1282_v8 }
  0x35   : > { %1202 = vmatpush3.bf16.msra.mxu1 %v1283_v9  ;;  %1181 = vmatprep.subr.bf16.mxu0 %v1284_v10 }
  0x36   : > { %1203 = vmatprep.subr.bf16.mxu1 %v1285_v11 }
  0x38   : > { %1182 = vmatpush3.bf16.msra.mxu0 %v1286_v12 }
  0x39   : > { %1204 = vmatpush3.bf16.msra.mxu1 %v1287_v13  ;;  %1183 = vmatprep.subr.bf16.mxu0 %v1288_v14 }
  0x3a   : > { %1205 = vmatprep.subr.bf16.mxu1 %v1289_v15 }
  0x3c   : > { %1184 = vmatpush3.bf16.msra.mxu0 %v1290_v16 }
  0x3d   : > { %1206 = vmatpush3.bf16.msra.mxu1 %v1291_v17  ;;  %1185 = vmatprep.subr.bf16.mxu0 %v1292_v18 }
  0x3e   : > { %1207 = vmatprep.subr.bf16.mxu1 %v1293_v19 }
  0x40   : > { %1186 = vmatpush3.bf16.msra.mxu0 %v1294_v20 }
  0x41   : > { %1208 = vmatpush3.bf16.msra.mxu1 %v1295_v21  ;;  %1187 = vmatprep.subr.bf16.mxu0 %v1296_v22 }
  0x42   : > { %1209 = vmatprep.subr.bf16.mxu1 %v1297_v23 }
  0x44   : > { %1188 = vmatpush3.bf16.msra.mxu0 %v1298_v24 }
  0x45   : > { %1210 = vmatpush3.bf16.msra.mxu1 %v1299_v25 }
  0x47   : > { %891 = vmatmul.mubr.bf16.vlgmr.msra.gmra.mrb[4].mxu0 %v1085_v28 }
  0x48   : > { %932 = vmatmul.mubr.bf16.vlgmr.msra.gmra.mrb[4].mxu1 %v1087_v30 }
  0xfa   : > { %v1145_v33 = vpop.f32.mrb[0].mxu0 }
  0xfb   : > { %v1167_v34 = vpop.f32.mrb[0].mxu1  ;;  %v1146_v35 = vpop.f32.mrb[1].mxu0 }
  0xfc   : > { %v1147_v36 = vadd.f32 %v1146_v35, %v1145_v33  ;;  %v1168_v38 = vpop.f32.mrb[1].mxu1  ;;  %v1148_v39 = vpop.f32.mrb[2].mxu0 }
  0xfd   : > { %v1169_v40 = vadd.f32 %v1168_v38, %v1167_v34  ;;  %v1170_v41 = vpop.f32.mrb[2].mxu1  ;;  %v1149_v42 = vpop.f32.mrb[3].mxu0 }
  0xfe   : > { %v1150_v32 = vadd.f32 %v1149_v42, %v1148_v39  ;;  %v1171_v43 = vpop.f32.mrb[3].mxu1 }
  0xff   : > { %v646_v44 = vadd.f32 %v1169_v40, %v1147_v36  ;;  %v1172_v45 = vadd.f32 %v1171_v43, %v1170_v41 }
 0x101   : > { %v649_v37 = vadd.f32 %v1172_v45, %v1150_v32 }
 0x11a   : > { %v1189_v46 = vpop.f32.mrb[4].mxu0 }
 0x11b   : > { %v1211_v47 = vpop.f32.mrb[4].mxu1  ;;  %v1190_v48 = vpop.f32.mrb[5].mxu0 }
 0x11c   : > { %v1212_v49 = vpop.f32.mrb[5].mxu1  ;;  %v1191_v50 = vadd.f32 %v1190_v48, %v1189_v46  ;;  %v1192_v52 = vpop.f32.mrb[6].mxu0 }
 0x11d   : > { %v1213_v51 = vadd.f32 %v1212_v49, %v1211_v47  ;;  %v1214_v53 = vpop.f32.mrb[6].mxu1  ;;  %v1193_v54 = vpop.f32.mrb[7].mxu0 }
 0x11e   : > { %v1215_v55 = vpop.f32.mrb[7].mxu1  ;;  %v893_v56 = vadd.f32 %v1191_v50, %v646_v44  ;;  %v1194_v57 = vadd.f32 %v1193_v54, %v1192_v52 }
 0x11f   : > { %v1216_v58 = vadd.f32 %v1215_v55, %v1214_v53 }
 0x120   : > { %v896_v59 = vadd.f32 %v1194_v57, %v649_v37  ;;  %v934_v60 = vadd.f32 %v1213_v51, %v893_v56 }
 0x122   : > { %v937_v61 = vadd.f32 %v1216_v58, %v896_v59  ;;  %942 = vrot.lane.b32.xlu0 %v934_v60, %s1312_s6 }
 0x126   : > { %944 = vrot.lane.b32.xlu0 %v937_v61, %s1312_s6 }
 0x194   : > { %v943_v62 = vpop.permute.xlu0 %942 }
 0x195   : > { %v948_v63 = vmax.f32 %v934_v60, %v943_v62 }
 0x197   : > { %952 = vrot.lane.b32.xlu1 %v948_v63, %s1313_s5 }
 0x198   : > { %v945_v0 = vpop.permute.xlu0 %944 }
 0x199   : > { %v949_v1 = vmax.f32 %v937_v61, %v945_v0 }
 0x19b   : > { %954 = vrot.lane.b32.xlu1 %v949_v1, %s1313_s5 }
 0x209   : > { %v953_v3 = vpop.permute.xlu1 %952 }
 0x20a   : > { %v958_v4 = vmax.f32 %v948_v63, %v953_v3 }
 0x20c   : > { %v967_v5 = vadd.f32 %v1121_v2, %v958_v4 }
 0x20d   : > { %v955_v6 = vpop.permute.xlu1 %954 }
 0x20e   : > { %v969_v7 = vmax.f32 %v967_v5, 0.0  ;;  %v959_v8 = vmax.f32 %v949_v1, %v955_v6 }
 0x210   : > { %v1127_v9 = vpack.c.bf16 %v969_v7, %v969_v7  ;;  %v968_v10 = vadd.f32 %v1121_v2, %v959_v8 }
 0x212   : > { %980 = vst.msk [vmem:[%s197_s12] sm:$0xf] %vm979_vm1, %v1127_v9  ;;  %v970_v11 = vmax.f32 %v968_v10, 0.0 }
 0x214   : > { %v1128_v12 = vpack.c.bf16 %v970_v11, %v970_v11 }
 0x216   : > { %981 = vst.msk [vmem:[%s197_s12 + $0x4] sm:$0xf] %vm979_vm1, %v1128_v12 }
 0x217 PF: > { %s14_s15 = sadd.s32 1, %s1310_s15  }
 0x218   : > { %p11_p4 = scmp.ge.s32.totalorder %s14_s15, 4  }
 0x21a   :  { %13 = sbr.rel (!%p11_p4) target bundleno = 1 (0x1), region = 66 }

// kernel: complex2vec_forward.5
= control target key start
LH: loop header
LB: loop body
LE: loop exit
PB: predicated region body
PF: predicated region fallthrough
CT: control target
= control target key end

     0   :  { %vm19_vm0 = vcmask 261120   ;;  %v512_v38 = vmov 0.0   ;;  %s644_s1 = inlined_call_operand.vmem [shape: bf16[512,32], index: 1, kind: input, shape index: {}]   ;;  %s645_s0 = inlined_call_operand.vmem [shape: bf16[8,512], index: 0, kind: input, shape index: {}]   ;;  %s646_s2 = inlined_call_operand.vmem [shape: f32[1,32], index: 2, kind: input, shape index: {}]   ;;  %s647_s3 = inlined_call_operand.vmem [shape: f32[8,32], index: 3, kind: output, shape index: {}]  }
   0x1   :  { %v476_v0 = vld [vmem:[%s644_s1 + $0x40] sm:$0xff]   ;;  %v480_v4 = vld [vmem:[%s644_s1 + $0x48] sm:$0xff]   ;;  %v484_v8 = vld [vmem:[%s644_s1 + $0x50] sm:$0xff]   ;;  %20 = vst.msk [vmem:[#allocation2] sm:$0xff] %vm19_vm0, %v512_v38 }
   0x2   :  { %v477_v1 = vld [vmem:[%s644_s1 + $0xc0] sm:$0xff]   ;;  %431 = vmatprep.subr.bf16.mxu0 %v476_v0  ;;  %v481_v5 = vld [vmem:[%s644_s1 + $0xc8] sm:$0xff]   ;;  %v485_v9 = vld [vmem:[%s644_s1 + $0xd0] sm:$0xff]  }
   0x3   :  { %v478_v2 = vld [vmem:[%s644_s1] sm:$0xff]   ;;  %453 = vmatprep.subr.bf16.mxu1 %v477_v1  ;;  %v482_v6 = vld [vmem:[%s644_s1 + $0x8] sm:$0xff]   ;;  %v486_v10 = vld [vmem:[%s644_s1 + $0x10] sm:$0xff]  }
   0x4   :  { %v479_v3 = vld [vmem:[%s644_s1 + $0x80] sm:$0xff]   ;;  %432 = vmatpush3.bf16.msra.mxu0 %v478_v2  ;;  %v483_v7 = vld [vmem:[%s644_s1 + $0x88] sm:$0xff]   ;;  %v487_v11 = vld [vmem:[%s644_s1 + $0x90] sm:$0xff]  }
   0x5   :  { %454 = vmatpush3.bf16.msra.mxu1 %v479_v3  ;;  %433 = vmatprep.subr.bf16.mxu0 %v480_v4  ;;  %v488_v12 = vld [vmem:[%s644_s1 + $0x58] sm:$0xff]   ;;  %v492_v16 = vld [vmem:[%s644_s1 + $0x60] sm:$0xff]   ;;  %v496_v20 = vld [vmem:[%s644_s1 + $0x68] sm:$0xff]  }
   0x6   :  { %455 = vmatprep.subr.bf16.mxu1 %v481_v5  ;;  %v489_v13 = vld [vmem:[%s644_s1 + $0xd8] sm:$0xff]   ;;  %v493_v17 = vld [vmem:[%s644_s1 + $0xe0] sm:$0xff]   ;;  %v497_v21 = vld [vmem:[%s644_s1 + $0xe8] sm:$0xff]  }
   0x7   :  { %v490_v14 = vld [vmem:[%s644_s1 + $0x18] sm:$0xff]   ;;  %v494_v18 = vld [vmem:[%s644_s1 + $0x20] sm:$0xff]   ;;  %v498_v22 = vld [vmem:[%s644_s1 + $0x28] sm:$0xff]  }
   0x8   :  { %434 = vmatpush3.bf16.msra.mxu0 %v482_v6  ;;  %v491_v15 = vld [vmem:[%s644_s1 + $0x98] sm:$0xff]   ;;  %v495_v19 = vld [vmem:[%s644_s1 + $0xa0] sm:$0xff]   ;;  %v499_v23 = vld [vmem:[%s644_s1 + $0xa8] sm:$0xff]  }
   0x9   :  { %456 = vmatpush3.bf16.msra.mxu1 %v483_v7  ;;  %435 = vmatprep.subr.bf16.mxu0 %v484_v8  ;;  %v500_v24 = vld [vmem:[%s644_s1 + $0x70] sm:$0xff]   ;;  %v504_v28 = vld [vmem:[%s644_s1 + $0x78] sm:$0xff]   ;;  %v22_v32 = vld [vmem:[%s645_s0] sm:$0xff] }
   0xa   :  { %457 = vmatprep.subr.bf16.mxu1 %v485_v9  ;;  %v501_v25 = vld [vmem:[%s644_s1 + $0xf0] sm:$0xff]   ;;  %v505_v29 = vld [vmem:[%s644_s1 + $0xf8] sm:$0xff]   ;;  %v23_v33 = vld [vmem:[%s645_s0 + $0x8] sm:$0xff]  ;;  %v394_v34 = vcombine.low %v22_v32, %v22_v32  ;;  %v395_v35 = vcombine.high %v22_v32, %v22_v32 }
   0xb   :  { %v502_v26 = vld [vmem:[%s644_s1 + $0x30] sm:$0xff]   ;;  %v506_v30 = vld [vmem:[%s644_s1 + $0x38] sm:$0xff]   ;;  %v396_v36 = vcombine.low %v23_v33, %v23_v33  ;;  %v397_v37 = vcombine.high %v23_v33, %v23_v33  ;;  %v21_v47 = vld [vmem:[#allocation2] sm:$0xff] }
   0xc   :  { %436 = vmatpush3.bf16.msra.mxu0 %v486_v10  ;;  %v503_v27 = vld [vmem:[%s644_s1 + $0xb0] sm:$0xff]   ;;  %v507_v31 = vld [vmem:[%s644_s1 + $0xb8] sm:$0xff]   ;;  %326 = vmatprep.mubr.bf16.mxu0 %v395_v35  ;;  %v430_v52 = vld [vmem:[%s646_s2] ss:$0 sm:$0xff] }
   0xd   :  { %458 = vmatpush3.bf16.msra.mxu1 %v487_v11  ;;  %437 = vmatprep.subr.bf16.mxu0 %v488_v12 }
   0xe   :  { %459 = vmatprep.subr.bf16.mxu1 %v489_v13  ;;  %366 = vmatprep.mubr.bf16.mxu1 %v397_v37 }
  0x10   :  { %438 = vmatpush3.bf16.msra.mxu0 %v490_v14 }
  0x11   :  { %460 = vmatpush3.bf16.msra.mxu1 %v491_v15  ;;  %439 = vmatprep.subr.bf16.mxu0 %v492_v16 }
  0x12   :  { %461 = vmatprep.subr.bf16.mxu1 %v493_v17 }
  0x14   :  { %440 = vmatpush3.bf16.msra.mxu0 %v494_v18 }
  0x15   :  { %462 = vmatpush3.bf16.msra.mxu1 %v495_v19  ;;  %441 = vmatprep.subr.bf16.mxu0 %v496_v20 }
  0x16   :  { %463 = vmatprep.subr.bf16.mxu1 %v497_v21 }
  0x18   :  { %442 = vmatpush3.bf16.msra.mxu0 %v498_v22 }
  0x19   :  { %464 = vmatpush3.bf16.msra.mxu1 %v499_v23  ;;  %443 = vmatprep.subr.bf16.mxu0 %v500_v24 }
  0x1a   :  { %465 = vmatprep.subr.bf16.mxu1 %v501_v25 }
  0x1c   :  { %444 = vmatpush3.bf16.msra.mxu0 %v502_v26 }
  0x1d   :  { %466 = vmatpush3.bf16.msra.mxu1 %v503_v27  ;;  %445 = vmatprep.subr.bf16.mxu0 %v504_v28 }
  0x1e   :  { %467 = vmatprep.subr.bf16.mxu1 %v505_v29 }
  0x20   :  { %446 = vmatpush3.bf16.msra.mxu0 %v506_v30 }
  0x21   :  { %468 = vmatpush3.bf16.msra.mxu1 %v507_v31 }
  0x23   :  { %327 = vmatmul.mubr.bf16.vlgmr.msra.gmra.mrb[0].mxu0 %v394_v34 }
  0x24   :  { %367 = vmatmul.mubr.bf16.vlgmr.msra.gmra.mrb[0].mxu1 %v396_v36 }
  0xf6   :  { %v447_v39 = vpop.f32.mrb[0].mxu0 }
  0xf7   :  { %v469_v40 = vpop.f32.mrb[0].mxu1  ;;  %v448_v41 = vpop.f32.mrb[1].mxu0 }
  0xf8   :  { %v470_v42 = vpop.f32.mrb[1].mxu1  ;;  %v449_v43 = vadd.f32 %v448_v41, %v447_v39  ;;  %v450_v45 = vpop.f32.mrb[2].mxu0 }
  0xf9   :  { %v471_v44 = vadd.f32 %v470_v42, %v469_v40  ;;  %v472_v46 = vpop.f32.mrb[2].mxu1  ;;  %v451_v48 = vpop.f32.mrb[3].mxu0 }
  0xfa   :  { %v473_v49 = vpop.f32.mrb[3].mxu1 }
  0xfb   :  { %v369_v50 = vadd.f32 %v471_v44, %v449_v43 }
  0xfd   :  { %v374_v51 = vadd.f32 %v369_v50, %v21_v47 }
  0xff   :  { %376 = vst.msk [vmem:[#allocation2] sm:$0xff] %vm19_vm0, %v374_v51 }
 0x106   :  { %v380_v53 = vld [vmem:[#allocation2] sm:$0xff] }
 0x107   :  { %v388_v54 = vadd.f32 %v430_v52, %v380_v53 }
 0x109   :  { %389 = vst.msk [vmem:[%s647_s3] sm:$0xff] %vm19_vm0, %v388_v54 }

</bundles_post_ra>
